<compile_context>
chip_gen: v7x
topology: tpu7x:2x2x1
jax: 0.10.0
libtpu: 0.0.40
codegen_flags: <defaults>
</compile_context>

<pallas_src>
import jax
import jax.numpy as jnp
from jax.experimental import pallas as pl
from jax.experimental.pallas import tpu as pltpu

D = 3          # input_dim_mod (input_dim=3, janossy_k=1)
H = 50         # LSTM hidden size (model_out_shape)
HP = 128       # per-gate lane width, padded to a full vreg lane tile
GP = 4 * HP    # packed gate width [i | f | g | o]
N = 30         # num_neurons of rho MLP
L = 3          # num_layers of rho MLP


def jp_kernel(x_ref, wih_ref, whh_ref, b_ref,
              w1_ref, b1_ref, w2_ref, b2_ref, w3_ref, b3_ref,
              wf_ref, bf_ref, o_ref, xg_ref):
    # x_ref: (T, Bt, D) time-major batch tile; xg_ref: (T, Bt, GP) VMEM scratch
    T, B, _ = x_ref.shape

    # ---- prologue: hoisted input projection (independent of h/c) -----------
    # All T pushes are independent, so the MXU pipelines them back-to-back
    # before the serial recurrence begins; bias is folded in here once.
    wih = wih_ref[...]      # (D, GP), a handful of vregs
    bias = b_ref[...]       # (1, GP)
    for t in range(T):
        xg_ref[t] = jnp.dot(x_ref[t], wih,
                            preferred_element_type=jnp.float32) + bias

    def sigmoid(z):
        # exact identity 1/(1+e^-z) == 0.5*tanh(z/2)+0.5; tanh uses the EUP slot.
        return 0.5 * jnp.tanh(0.5 * z) + 0.5

    whh = whh_ref[...]      # (HP, GP), hoisted out of the recurrence
    h = jnp.zeros((B, HP), jnp.float32)
    c = jnp.zeros((B, HP), jnp.float32)

    # ---- recurrence: fully unrolled; one dependent matmul per step ---------
    for t in range(T):
        gates = xg_ref[t] + jnp.dot(h, whh, preferred_element_type=jnp.float32)
        # gate slices sit exactly on 128-lane tile boundaries (no cross-lane work)
        i_g = sigmoid(gates[:, 0 * HP:1 * HP])
        f_g = sigmoid(gates[:, 1 * HP:2 * HP])
        g_g = jnp.tanh(gates[:, 2 * HP:3 * HP])
        o_g = sigmoid(gates[:, 3 * HP:4 * HP])
        c = f_g * c + i_g * g_g
        h = o_g * jnp.tanh(c)
        # padded lanes [H:HP] of gates are identically 0 => c,h stay 0 there.

    # ---- rho MLP: 3 x (Linear + Tanh) --------------------------------------
    # w1 rows beyond H are zero, so padded h lanes cannot leak into the MLP.
    r = jnp.tanh(jnp.dot(h, w1_ref[...],
                         preferred_element_type=jnp.float32) + b1_ref[...])
    r = jnp.tanh(jnp.dot(r, w2_ref[...],
                         preferred_element_type=jnp.float32) + b2_ref[...])
    r = jnp.tanh(jnp.dot(r, w3_ref[...],
                         preferred_element_type=jnp.float32) + b3_ref[...])

    # ---- final 30 -> 1 on VPU/XLU (avoid a 1-column MXU pass) --------------
    out = jnp.sum(r * wf_ref[...], axis=-1, keepdims=True) + bf_ref[...]
    o_ref[...] = out.astype(o_ref.dtype)


def jp_forward(x_btd, packed, *, b_tile=128):
    """x_btd: (B, T, D) batch-first like the PyTorch module. Returns (B, 1)."""
    B, T, _ = x_btd.shape

    # Choose a sublane-aligned batch tile and pad the batch up to a multiple.
    b_aligned = -(-B // 8) * 8
    bt = min(b_tile, b_aligned)
    Bp = -(-B // bt) * bt
    if Bp != B:
        x_btd = jnp.pad(x_btd, ((0, Bp - B), (0, 0), (0, 0)))

    x_tbd = jnp.transpose(x_btd, (1, 0, 2))  # -> (T, Bp, D) time-major

    weights = (packed["wih"], packed["whh"], packed["blstm"],
               packed["w1"], packed["b1"],
               packed["w2"], packed["b2"],
               packed["w3"], packed["b3"],
               packed["wf"], packed["bf"])

    def full_spec(arr):
        # Whole-array block with a constant index map: Pallas revisits the same
        # block every grid step, so each weight is DMA'd into VMEM only once.
        nd = arr.ndim
        return pl.BlockSpec(arr.shape, lambda i, _nd=nd: (0,) * _nd)

    out = pl.pallas_call(
        jp_kernel,
        out_shape=jax.ShapeDtypeStruct((Bp, 1), jnp.float32),
        grid=(Bp // bt,),
        in_specs=[pl.BlockSpec((T, bt, D), lambda i: (0, i, 0))]
                 + [full_spec(w) for w in weights],
        out_specs=pl.BlockSpec((bt, 1), lambda i: (i, 0)),
        scratch_shapes=[pltpu.VMEM((T, bt, GP), jnp.float32)],
        compiler_params=pltpu.CompilerParams(
            dimension_semantics=("parallel",)),
    )(x_tbd, *weights)
    return out[:B]


def init_params(key):
    """Canonical (unpacked) parameters matching the PyTorch module shapes."""
    ks = jax.random.split(key, 8)

    def uniform(k, shape, limit):
        return jax.random.uniform(k, shape, jnp.float32, -limit, limit)

    def xavier(k, fan_in, fan_out):
        lim = (6.0 / (fan_in + fan_out)) ** 0.5
        return uniform(k, (fan_in, fan_out), lim)

    klstm = 1.0 / (H ** 0.5)  # PyTorch LSTM default uniform(-1/sqrt(H), 1/sqrt(H))
    return {
        # LSTM weights, gate order [i, f, g, o], stored pre-transposed for x @ W
        "wih": uniform(ks[0], (4, D, H), klstm),
        "whh": uniform(ks[1], (4, H, H), klstm),
        # combined bias (b_ih + b_hh)
        "blstm": uniform(ks[2], (4, 1, H), 2.0 * klstm),
        # rho MLP (xavier_uniform weights, zero biases), stored (in, out)
        "w1": xavier(ks[3], H, N), "b1": jnp.zeros((1, N), jnp.float32),
        "w2": xavier(ks[4], N, N), "b2": jnp.zeros((1, N), jnp.float32),
        "w3": xavier(ks[5], N, N), "b3": jnp.zeros((1, N), jnp.float32),
        # final layer
        "wf": xavier(ks[6], N, 1), "bf": jnp.zeros((1, 1), jnp.float32),
    }


def pack_params(p):
    """Pack/pad canonical params into the kernel's 128-lane-per-gate layout."""
    def pack_gate_cols(w):  # w: (4, rows, H) -> (rows, GP), zero-padded per gate
        rows = w.shape[1]
        out = jnp.zeros((rows, GP), jnp.float32)
        for g in range(4):
            out = out.at[:, g * HP:g * HP + H].set(w[g])
        return out

    wih_p = pack_gate_cols(p["wih"])                                  # (D, GP)
    whh_p = jnp.zeros((HP, GP), jnp.float32).at[:H, :].set(
        pack_gate_cols(p["whh"]))                                     # (HP, GP)
    b_p = pack_gate_cols(p["blstm"])                                  # (1, GP)
    w1_p = jnp.zeros((HP, N), jnp.float32).at[:H, :].set(p["w1"])     # (HP, N)
    return {
        "wih": wih_p, "whh": whh_p, "blstm": b_p,
        "w1": w1_p, "b1": p["b1"],
        "w2": p["w2"], "b2": p["b2"],
        "w3": p["w3"], "b3": p["b3"],
        "wf": p["wf"].T,      # (1, N) row for the VPU multiply-reduce
        "bf": p["bf"],
    }


def jp_reference(x_btd, params):
    """Pure-JAX reference of the same forward pass (canonical params)."""
    B, T, _ = x_btd.shape
    h = jnp.zeros((B, H), jnp.float32)
    c = jnp.zeros((B, H), jnp.float32)
    for t in range(T):
        x_t = x_btd[:, t, :]
        gi = x_t @ params["wih"][0] + h @ params["whh"][0] + params["blstm"][0]
        gf = x_t @ params["wih"][1] + h @ params["whh"][1] + params["blstm"][1]
        gg = x_t @ params["wih"][2] + h @ params["whh"][2] + params["blstm"][2]
        go = x_t @ params["wih"][3] + h @ params["whh"][3] + params["blstm"][3]
        c = jax.nn.sigmoid(gf) * c + jax.nn.sigmoid(gi) * jnp.tanh(gg)
        h = jax.nn.sigmoid(go) * jnp.tanh(c)
    r = jnp.tanh(h @ params["w1"] + params["b1"])
    r = jnp.tanh(r @ params["w2"] + params["b2"])
    r = jnp.tanh(r @ params["w3"] + params["b3"])
    return r @ params["wf"] + params["bf"]


if __name__ == "__main__":
    key = jax.random.PRNGKey(0)
    k_x, k_p = jax.random.split(key)

    B, T = 8, 8  # small batch, short sequence; feature dim = input_dim_mod = 3
    x = jax.random.normal(k_x, (B, T, D), jnp.float32)
    params = init_params(k_p)
    packed = pack_params(params)

    out = jp_forward(x, packed)
    out = jax.block_until_ready(out)

    ref = jp_reference(x, params)
    assert out.shape == (B, 1), out.shape
    assert jnp.allclose(out, ref, rtol=1e-4, atol=1e-5), (out, ref)

    print("KERNEL_OK")
</pallas_src>

<mosaic_0001>
module attributes {stable_mosaic.version = 11 : i64} {
  func.func @jp_kernel(%arg0: i32, %arg1: memref<8x8x3xf32, #tpu.memory_space<vmem>>, %arg2: memref<3x512xf32, #tpu.memory_space<vmem>>, %arg3: memref<128x512xf32, #tpu.memory_space<vmem>>, %arg4: memref<1x512xf32, #tpu.memory_space<vmem>>, %arg5: memref<128x30xf32, #tpu.memory_space<vmem>>, %arg6: memref<1x30xf32, #tpu.memory_space<vmem>>, %arg7: memref<30x30xf32, #tpu.memory_space<vmem>>, %arg8: memref<1x30xf32, #tpu.memory_space<vmem>>, %arg9: memref<30x30xf32, #tpu.memory_space<vmem>>, %arg10: memref<1x30xf32, #tpu.memory_space<vmem>>, %arg11: memref<1x30xf32, #tpu.memory_space<vmem>>, %arg12: memref<1x1xf32, #tpu.memory_space<vmem>>, %arg13: memref<8x1xf32, #tpu.memory_space<vmem>>, %arg14: memref<8x8x512xf32, #tpu.memory_space<vmem>>) attributes {dimension_semantics = [#tpu.dimension_semantics<parallel>], iteration_bounds = array<i64: 1>, scalar_prefetch = 0 : i64, scratch_operands = 1 : i64, tpu.core_type = #tpu.core_type<tc>, window_params = [{transform_indices = @transform_0, window_bounds = array<i64: 8, 8, 3>}, {pipeline_mode = #tpu.pipeline_mode<synchronous>, transform_indices = @transform_1, window_bounds = array<i64: 3, 512>}, {pipeline_mode = #tpu.pipeline_mode<synchronous>, transform_indices = @transform_2, window_bounds = array<i64: 128, 512>}, {pipeline_mode = #tpu.pipeline_mode<synchronous>, transform_indices = @transform_3, window_bounds = array<i64: 1, 512>}, {pipeline_mode = #tpu.pipeline_mode<synchronous>, transform_indices = @transform_4, window_bounds = array<i64: 128, 30>}, {pipeline_mode = #tpu.pipeline_mode<synchronous>, transform_indices = @transform_5, window_bounds = array<i64: 1, 30>}, {pipeline_mode = #tpu.pipeline_mode<synchronous>, transform_indices = @transform_6, window_bounds = array<i64: 30, 30>}, {pipeline_mode = #tpu.pipeline_mode<synchronous>, transform_indices = @transform_7, window_bounds = array<i64: 1, 30>}, {pipeline_mode = #tpu.pipeline_mode<synchronous>, transform_indices = @transform_8, window_bounds = array<i64: 30, 30>}, {pipeline_mode = #tpu.pipeline_mode<synchronous>, transform_indices = @transform_9, window_bounds = array<i64: 1, 30>}, {pipeline_mode = #tpu.pipeline_mode<synchronous>, transform_indices = @transform_10, window_bounds = array<i64: 1, 30>}, {pipeline_mode = #tpu.pipeline_mode<synchronous>, transform_indices = @transform_11, window_bounds = array<i64: 1, 1>}, {transform_indices = @transform_12, window_bounds = array<i64: 8, 1>}]} {
    %c0 = arith.constant 0 : index
    %c0_0 = arith.constant 0 : index
    %0 = vector.load %arg2[%c0, %c0_0] : memref<3x512xf32, #tpu.memory_space<vmem>>, vector<3x512xf32>
    %c0_1 = arith.constant 0 : index
    %c0_2 = arith.constant 0 : index
    %1 = vector.load %arg4[%c0_1, %c0_2] : memref<1x512xf32, #tpu.memory_space<vmem>>, vector<1x512xf32>
    %c0_3 = arith.constant 0 : index
    %c0_4 = arith.constant 0 : index
    %c0_5 = arith.constant 0 : index
    %2 = vector.load %arg1[%c0_3, %c0_4, %c0_5] : memref<8x8x3xf32, #tpu.memory_space<vmem>>, vector<1x8x3xf32>
    %3 = vector.shape_cast %2 : vector<1x8x3xf32> to vector<8x3xf32>
    %cst = arith.constant dense<0.000000e+00> : vector<8x512xf32>
    %4 = tpu.matmul %3, %0, %cst {dimension_numbers = #tpu.dot_dimension_numbers<[1], [0], [0], [1], [0, 0, 1, 1], [], []>} : vector<8x3xf32>, vector<3x512xf32>, vector<8x512xf32> -> vector<8x512xf32>
    %5 = vector.broadcast %1 : vector<1x512xf32> to vector<8x512xf32>
    %6 = arith.addf %4, %5 : vector<8x512xf32>
    %c0_6 = arith.constant 0 : index
    %c0_7 = arith.constant 0 : index
    %c0_8 = arith.constant 0 : index
    %7 = vector.load %arg14[%c0_6, %c0_7, %c0_8] : memref<8x8x512xf32, #tpu.memory_space<vmem>>, vector<1x8x512xf32>
    %8 = vector.shape_cast %7 : vector<1x8x512xf32> to vector<8x512xf32>
    %9 = vector.shape_cast %6 : vector<8x512xf32> to vector<1x8x512xf32>
    tpu.vector_store %arg14[%c0_6, %c0_7, %c0_8], %9 {strides = array<i32>} : memref<8x8x512xf32, #tpu.memory_space<vmem>>, vector<1x8x512xf32>,
    %c1 = arith.constant 1 : index
    %c0_9 = arith.constant 0 : index
    %c0_10 = arith.constant 0 : index
    %10 = vector.load %arg1[%c1, %c0_9, %c0_10] : memref<8x8x3xf32, #tpu.memory_space<vmem>>, vector<1x8x3xf32>
    %11 = vector.shape_cast %10 : vector<1x8x3xf32> to vector<8x3xf32>
    %cst_11 = arith.constant dense<0.000000e+00> : vector<8x512xf32>
    %12 = tpu.matmul %11, %0, %cst_11 {dimension_numbers = #tpu.dot_dimension_numbers<[1], [0], [0], [1], [0, 0, 1, 1], [], []>} : vector<8x3xf32>, vector<3x512xf32>, vector<8x512xf32> -> vector<8x512xf32>
    %13 = vector.broadcast %1 : vector<1x512xf32> to vector<8x512xf32>
    %14 = arith.addf %12, %13 : vector<8x512xf32>
    %c1_12 = arith.constant 1 : index
    %c0_13 = arith.constant 0 : index
    %c0_14 = arith.constant 0 : index
    %15 = vector.load %arg14[%c1_12, %c0_13, %c0_14] : memref<8x8x512xf32, #tpu.memory_space<vmem>>, vector<1x8x512xf32>
    %16 = vector.shape_cast %15 : vector<1x8x512xf32> to vector<8x512xf32>
    %17 = vector.shape_cast %14 : vector<8x512xf32> to vector<1x8x512xf32>
    tpu.vector_store %arg14[%c1_12, %c0_13, %c0_14], %17 {strides = array<i32>} : memref<8x8x512xf32, #tpu.memory_space<vmem>>, vector<1x8x512xf32>,
    %c2 = arith.constant 2 : index
    %c0_15 = arith.constant 0 : index
    %c0_16 = arith.constant 0 : index
    %18 = vector.load %arg1[%c2, %c0_15, %c0_16] : memref<8x8x3xf32, #tpu.memory_space<vmem>>, vector<1x8x3xf32>
    %19 = vector.shape_cast %18 : vector<1x8x3xf32> to vector<8x3xf32>
    %cst_17 = arith.constant dense<0.000000e+00> : vector<8x512xf32>
    %20 = tpu.matmul %19, %0, %cst_17 {dimension_numbers = #tpu.dot_dimension_numbers<[1], [0], [0], [1], [0, 0, 1, 1], [], []>} : vector<8x3xf32>, vector<3x512xf32>, vector<8x512xf32> -> vector<8x512xf32>
    %21 = vector.broadcast %1 : vector<1x512xf32> to vector<8x512xf32>
    %22 = arith.addf %20, %21 : vector<8x512xf32>
    %c2_18 = arith.constant 2 : index
    %c0_19 = arith.constant 0 : index
    %c0_20 = arith.constant 0 : index
    %23 = vector.load %arg14[%c2_18, %c0_19, %c0_20] : memref<8x8x512xf32, #tpu.memory_space<vmem>>, vector<1x8x512xf32>
    %24 = vector.shape_cast %23 : vector<1x8x512xf32> to vector<8x512xf32>
    %25 = vector.shape_cast %22 : vector<8x512xf32> to vector<1x8x512xf32>
    tpu.vector_store %arg14[%c2_18, %c0_19, %c0_20], %25 {strides = array<i32>} : memref<8x8x512xf32, #tpu.memory_space<vmem>>, vector<1x8x512xf32>,
    %c3 = arith.constant 3 : index
    %c0_21 = arith.constant 0 : index
    %c0_22 = arith.constant 0 : index
    %26 = vector.load %arg1[%c3, %c0_21, %c0_22] : memref<8x8x3xf32, #tpu.memory_space<vmem>>, vector<1x8x3xf32>
    %27 = vector.shape_cast %26 : vector<1x8x3xf32> to vector<8x3xf32>
    %cst_23 = arith.constant dense<0.000000e+00> : vector<8x512xf32>
    %28 = tpu.matmul %27, %0, %cst_23 {dimension_numbers = #tpu.dot_dimension_numbers<[1], [0], [0], [1], [0, 0, 1, 1], [], []>} : vector<8x3xf32>, vector<3x512xf32>, vector<8x512xf32> -> vector<8x512xf32>
    %29 = vector.broadcast %1 : vector<1x512xf32> to vector<8x512xf32>
    %30 = arith.addf %28, %29 : vector<8x512xf32>
    %c3_24 = arith.constant 3 : index
    %c0_25 = arith.constant 0 : index
    %c0_26 = arith.constant 0 : index
    %31 = vector.load %arg14[%c3_24, %c0_25, %c0_26] : memref<8x8x512xf32, #tpu.memory_space<vmem>>, vector<1x8x512xf32>
    %32 = vector.shape_cast %31 : vector<1x8x512xf32> to vector<8x512xf32>
    %33 = vector.shape_cast %30 : vector<8x512xf32> to vector<1x8x512xf32>
    tpu.vector_store %arg14[%c3_24, %c0_25, %c0_26], %33 {strides = array<i32>} : memref<8x8x512xf32, #tpu.memory_space<vmem>>, vector<1x8x512xf32>,
    %c4 = arith.constant 4 : index
    %c0_27 = arith.constant 0 : index
    %c0_28 = arith.constant 0 : index
    %34 = vector.load %arg1[%c4, %c0_27, %c0_28] : memref<8x8x3xf32, #tpu.memory_space<vmem>>, vector<1x8x3xf32>
    %35 = vector.shape_cast %34 : vector<1x8x3xf32> to vector<8x3xf32>
    %cst_29 = arith.constant dense<0.000000e+00> : vector<8x512xf32>
    %36 = tpu.matmul %35, %0, %cst_29 {dimension_numbers = #tpu.dot_dimension_numbers<[1], [0], [0], [1], [0, 0, 1, 1], [], []>} : vector<8x3xf32>, vector<3x512xf32>, vector<8x512xf32> -> vector<8x512xf32>
    %37 = vector.broadcast %1 : vector<1x512xf32> to vector<8x512xf32>
    %38 = arith.addf %36, %37 : vector<8x512xf32>
    %c4_30 = arith.constant 4 : index
    %c0_31 = arith.constant 0 : index
    %c0_32 = arith.constant 0 : index
    %39 = vector.load %arg14[%c4_30, %c0_31, %c0_32] : memref<8x8x512xf32, #tpu.memory_space<vmem>>, vector<1x8x512xf32>
    %40 = vector.shape_cast %39 : vector<1x8x512xf32> to vector<8x512xf32>
    %41 = vector.shape_cast %38 : vector<8x512xf32> to vector<1x8x512xf32>
    tpu.vector_store %arg14[%c4_30, %c0_31, %c0_32], %41 {strides = array<i32>} : memref<8x8x512xf32, #tpu.memory_space<vmem>>, vector<1x8x512xf32>,
    %c5 = arith.constant 5 : index
    %c0_33 = arith.constant 0 : index
    %c0_34 = arith.constant 0 : index
    %42 = vector.load %arg1[%c5, %c0_33, %c0_34] : memref<8x8x3xf32, #tpu.memory_space<vmem>>, vector<1x8x3xf32>
    %43 = vector.shape_cast %42 : vector<1x8x3xf32> to vector<8x3xf32>
    %cst_35 = arith.constant dense<0.000000e+00> : vector<8x512xf32>
    %44 = tpu.matmul %43, %0, %cst_35 {dimension_numbers = #tpu.dot_dimension_numbers<[1], [0], [0], [1], [0, 0, 1, 1], [], []>} : vector<8x3xf32>, vector<3x512xf32>, vector<8x512xf32> -> vector<8x512xf32>
    %45 = vector.broadcast %1 : vector<1x512xf32> to vector<8x512xf32>
    %46 = arith.addf %44, %45 : vector<8x512xf32>
    %c5_36 = arith.constant 5 : index
    %c0_37 = arith.constant 0 : index
    %c0_38 = arith.constant 0 : index
    %47 = vector.load %arg14[%c5_36, %c0_37, %c0_38] : memref<8x8x512xf32, #tpu.memory_space<vmem>>, vector<1x8x512xf32>
    %48 = vector.shape_cast %47 : vector<1x8x512xf32> to vector<8x512xf32>
    %49 = vector.shape_cast %46 : vector<8x512xf32> to vector<1x8x512xf32>
    tpu.vector_store %arg14[%c5_36, %c0_37, %c0_38], %49 {strides = array<i32>} : memref<8x8x512xf32, #tpu.memory_space<vmem>>, vector<1x8x512xf32>,
    %c6 = arith.constant 6 : index
    %c0_39 = arith.constant 0 : index
    %c0_40 = arith.constant 0 : index
    %50 = vector.load %arg1[%c6, %c0_39, %c0_40] : memref<8x8x3xf32, #tpu.memory_space<vmem>>, vector<1x8x3xf32>
    %51 = vector.shape_cast %50 : vector<1x8x3xf32> to vector<8x3xf32>
    %cst_41 = arith.constant dense<0.000000e+00> : vector<8x512xf32>
    %52 = tpu.matmul %51, %0, %cst_41 {dimension_numbers = #tpu.dot_dimension_numbers<[1], [0], [0], [1], [0, 0, 1, 1], [], []>} : vector<8x3xf32>, vector<3x512xf32>, vector<8x512xf32> -> vector<8x512xf32>
    %53 = vector.broadcast %1 : vector<1x512xf32> to vector<8x512xf32>
    %54 = arith.addf %52, %53 : vector<8x512xf32>
    %c6_42 = arith.constant 6 : index
    %c0_43 = arith.constant 0 : index
    %c0_44 = arith.constant 0 : index
    %55 = vector.load %arg14[%c6_42, %c0_43, %c0_44] : memref<8x8x512xf32, #tpu.memory_space<vmem>>, vector<1x8x512xf32>
    %56 = vector.shape_cast %55 : vector<1x8x512xf32> to vector<8x512xf32>
    %57 = vector.shape_cast %54 : vector<8x512xf32> to vector<1x8x512xf32>
    tpu.vector_store %arg14[%c6_42, %c0_43, %c0_44], %57 {strides = array<i32>} : memref<8x8x512xf32, #tpu.memory_space<vmem>>, vector<1x8x512xf32>,
    %c7 = arith.constant 7 : index
    %c0_45 = arith.constant 0 : index
    %c0_46 = arith.constant 0 : index
    %58 = vector.load %arg1[%c7, %c0_45, %c0_46] : memref<8x8x3xf32, #tpu.memory_space<vmem>>, vector<1x8x3xf32>
    %59 = vector.shape_cast %58 : vector<1x8x3xf32> to vector<8x3xf32>
    %cst_47 = arith.constant dense<0.000000e+00> : vector<8x512xf32>
    %60 = tpu.matmul %59, %0, %cst_47 {dimension_numbers = #tpu.dot_dimension_numbers<[1], [0], [0], [1], [0, 0, 1, 1], [], []>} : vector<8x3xf32>, vector<3x512xf32>, vector<8x512xf32> -> vector<8x512xf32>
    %61 = vector.broadcast %1 : vector<1x512xf32> to vector<8x512xf32>
    %62 = arith.addf %60, %61 : vector<8x512xf32>
    %c7_48 = arith.constant 7 : index
    %c0_49 = arith.constant 0 : index
    %c0_50 = arith.constant 0 : index
    %63 = vector.load %arg14[%c7_48, %c0_49, %c0_50] : memref<8x8x512xf32, #tpu.memory_space<vmem>>, vector<1x8x512xf32>
    %64 = vector.shape_cast %63 : vector<1x8x512xf32> to vector<8x512xf32>
    %65 = vector.shape_cast %62 : vector<8x512xf32> to vector<1x8x512xf32>
    tpu.vector_store %arg14[%c7_48, %c0_49, %c0_50], %65 {strides = array<i32>} : memref<8x8x512xf32, #tpu.memory_space<vmem>>, vector<1x8x512xf32>,
    %c0_51 = arith.constant 0 : index
    %c0_52 = arith.constant 0 : index
    %66 = vector.load %arg3[%c0_51, %c0_52] : memref<128x512xf32, #tpu.memory_space<vmem>>, vector<128x512xf32>
    %cst_53 = arith.constant 0.000000e+00 : f32
    %67 = vector.broadcast %cst_53 : f32 to vector<8x128xf32>
    %cst_54 = arith.constant 0.000000e+00 : f32
    %68 = vector.broadcast %cst_54 : f32 to vector<8x128xf32>
    %c0_55 = arith.constant 0 : index
    %c0_56 = arith.constant 0 : index
    %c0_57 = arith.constant 0 : index
    %69 = vector.load %arg14[%c0_55, %c0_56, %c0_57] : memref<8x8x512xf32, #tpu.memory_space<vmem>>, vector<1x8x512xf32>
    %70 = vector.shape_cast %69 : vector<1x8x512xf32> to vector<8x512xf32>
    %cst_58 = arith.constant dense<0.000000e+00> : vector<8x512xf32>
    %71 = tpu.matmul %67, %66, %cst_58 {dimension_numbers = #tpu.dot_dimension_numbers<[1], [0], [0], [1], [0, 0, 1, 1], [], []>} : vector<8x128xf32>, vector<128x512xf32>, vector<8x512xf32> -> vector<8x512xf32>
    %72 = arith.addf %70, %71 : vector<8x512xf32>
    %73 = vector.extract_strided_slice %72 {offsets = [0, 0], sizes = [8, 128], strides = [1, 1]} : vector<8x512xf32> to vector<8x128xf32>
    %cst_59 = arith.constant 5.000000e-01 : f32
    %74 = vector.broadcast %cst_59 : f32 to vector<8x128xf32>
    %75 = arith.mulf %74, %73 : vector<8x128xf32>
    %76 = math.tanh %75 : vector<8x128xf32>
    %cst_60 = arith.constant 5.000000e-01 : f32
    %77 = vector.broadcast %cst_60 : f32 to vector<8x128xf32>
    %78 = arith.mulf %77, %76 : vector<8x128xf32>
    %cst_61 = arith.constant 5.000000e-01 : f32
    %79 = vector.broadcast %cst_61 : f32 to vector<8x128xf32>
    %80 = arith.addf %78, %79 : vector<8x128xf32>
    %81 = vector.extract_strided_slice %72 {offsets = [0, 128], sizes = [8, 128], strides = [1, 1]} : vector<8x512xf32> to vector<8x128xf32>
    %cst_62 = arith.constant 5.000000e-01 : f32
    %82 = vector.broadcast %cst_62 : f32 to vector<8x128xf32>
    %83 = arith.mulf %82, %81 : vector<8x128xf32>
    %84 = math.tanh %83 : vector<8x128xf32>
    %cst_63 = arith.constant 5.000000e-01 : f32
    %85 = vector.broadcast %cst_63 : f32 to vector<8x128xf32>
    %86 = arith.mulf %85, %84 : vector<8x128xf32>
    %cst_64 = arith.constant 5.000000e-01 : f32
    %87 = vector.broadcast %cst_64 : f32 to vector<8x128xf32>
    %88 = arith.addf %86, %87 : vector<8x128xf32>
    %89 = vector.extract_strided_slice %72 {offsets = [0, 256], sizes = [8, 128], strides = [1, 1]} : vector<8x512xf32> to vector<8x128xf32>
    %90 = math.tanh %89 : vector<8x128xf32>
    %91 = vector.extract_strided_slice %72 {offsets = [0, 384], sizes = [8, 128], strides = [1, 1]} : vector<8x512xf32> to vector<8x128xf32>
    %cst_65 = arith.constant 5.000000e-01 : f32
    %92 = vector.broadcast %cst_65 : f32 to vector<8x128xf32>
    %93 = arith.mulf %92, %91 : vector<8x128xf32>
    %94 = math.tanh %93 : vector<8x128xf32>
    %cst_66 = arith.constant 5.000000e-01 : f32
    %95 = vector.broadcast %cst_66 : f32 to vector<8x128xf32>
    %96 = arith.mulf %95, %94 : vector<8x128xf32>
    %cst_67 = arith.constant 5.000000e-01 : f32
    %97 = vector.broadcast %cst_67 : f32 to vector<8x128xf32>
    %98 = arith.addf %96, %97 : vector<8x128xf32>
    %99 = arith.mulf %88, %68 : vector<8x128xf32>
    %100 = arith.mulf %80, %90 : vector<8x128xf32>
    %101 = arith.addf %99, %100 : vector<8x128xf32>
    %102 = math.tanh %101 : vector<8x128xf32>
    %103 = arith.mulf %98, %102 : vector<8x128xf32>
    %c1_68 = arith.constant 1 : index
    %c0_69 = arith.constant 0 : index
    %c0_70 = arith.constant 0 : index
    %104 = vector.load %arg14[%c1_68, %c0_69, %c0_70] : memref<8x8x512xf32, #tpu.memory_space<vmem>>, vector<1x8x512xf32>
    %105 = vector.shape_cast %104 : vector<1x8x512xf32> to vector<8x512xf32>
    %cst_71 = arith.constant dense<0.000000e+00> : vector<8x512xf32>
    %106 = tpu.matmul %103, %66, %cst_71 {dimension_numbers = #tpu.dot_dimension_numbers<[1], [0], [0], [1], [0, 0, 1, 1], [], []>} : vector<8x128xf32>, vector<128x512xf32>, vector<8x512xf32> -> vector<8x512xf32>
    %107 = arith.addf %105, %106 : vector<8x512xf32>
    %108 = vector.extract_strided_slice %107 {offsets = [0, 0], sizes = [8, 128], strides = [1, 1]} : vector<8x512xf32> to vector<8x128xf32>
    %cst_72 = arith.constant 5.000000e-01 : f32
    %109 = vector.broadcast %cst_72 : f32 to vector<8x128xf32>
    %110 = arith.mulf %109, %108 : vector<8x128xf32>
    %111 = math.tanh %110 : vector<8x128xf32>
    %cst_73 = arith.constant 5.000000e-01 : f32
    %112 = vector.broadcast %cst_73 : f32 to vector<8x128xf32>
    %113 = arith.mulf %112, %111 : vector<8x128xf32>
    %cst_74 = arith.constant 5.000000e-01 : f32
    %114 = vector.broadcast %cst_74 : f32 to vector<8x128xf32>
    %115 = arith.addf %113, %114 : vector<8x128xf32>
    %116 = vector.extract_strided_slice %107 {offsets = [0, 128], sizes = [8, 128], strides = [1, 1]} : vector<8x512xf32> to vector<8x128xf32>
    %cst_75 = arith.constant 5.000000e-01 : f32
    %117 = vector.broadcast %cst_75 : f32 to vector<8x128xf32>
    %118 = arith.mulf %117, %116 : vector<8x128xf32>
    %119 = math.tanh %118 : vector<8x128xf32>
    %cst_76 = arith.constant 5.000000e-01 : f32
    %120 = vector.broadcast %cst_76 : f32 to vector<8x128xf32>
    %121 = arith.mulf %120, %119 : vector<8x128xf32>
    %cst_77 = arith.constant 5.000000e-01 : f32
    %122 = vector.broadcast %cst_77 : f32 to vector<8x128xf32>
    %123 = arith.addf %121, %122 : vector<8x128xf32>
    %124 = vector.extract_strided_slice %107 {offsets = [0, 256], sizes = [8, 128], strides = [1, 1]} : vector<8x512xf32> to vector<8x128xf32>
    %125 = math.tanh %124 : vector<8x128xf32>
    %126 = vector.extract_strided_slice %107 {offsets = [0, 384], sizes = [8, 128], strides = [1, 1]} : vector<8x512xf32> to vector<8x128xf32>
    %cst_78 = arith.constant 5.000000e-01 : f32
    %127 = vector.broadcast %cst_78 : f32 to vector<8x128xf32>
    %128 = arith.mulf %127, %126 : vector<8x128xf32>
    %129 = math.tanh %128 : vector<8x128xf32>
    %cst_79 = arith.constant 5.000000e-01 : f32
    %130 = vector.broadcast %cst_79 : f32 to vector<8x128xf32>
    %131 = arith.mulf %130, %129 : vector<8x128xf32>
    %cst_80 = arith.constant 5.000000e-01 : f32
    %132 = vector.broadcast %cst_80 : f32 to vector<8x128xf32>
    %133 = arith.addf %131, %132 : vector<8x128xf32>
    %134 = arith.mulf %123, %101 : vector<8x128xf32>
    %135 = arith.mulf %115, %125 : vector<8x128xf32>
    %136 = arith.addf %134, %135 : vector<8x128xf32>
    %137 = math.tanh %136 : vector<8x128xf32>
    %138 = arith.mulf %133, %137 : vector<8x128xf32>
    %c2_81 = arith.constant 2 : index
    %c0_82 = arith.constant 0 : index
    %c0_83 = arith.constant 0 : index
    %139 = vector.load %arg14[%c2_81, %c0_82, %c0_83] : memref<8x8x512xf32, #tpu.memory_space<vmem>>, vector<1x8x512xf32>
    %140 = vector.shape_cast %139 : vector<1x8x512xf32> to vector<8x512xf32>
    %cst_84 = arith.constant dense<0.000000e+00> : vector<8x512xf32>
    %141 = tpu.matmul %138, %66, %cst_84 {dimension_numbers = #tpu.dot_dimension_numbers<[1], [0], [0], [1], [0, 0, 1, 1], [], []>} : vector<8x128xf32>, vector<128x512xf32>, vector<8x512xf32> -> vector<8x512xf32>
    %142 = arith.addf %140, %141 : vector<8x512xf32>
    %143 = vector.extract_strided_slice %142 {offsets = [0, 0], sizes = [8, 128], strides = [1, 1]} : vector<8x512xf32> to vector<8x128xf32>
    %cst_85 = arith.constant 5.000000e-01 : f32
    %144 = vector.broadcast %cst_85 : f32 to vector<8x128xf32>
    %145 = arith.mulf %144, %143 : vector<8x128xf32>
    %146 = math.tanh %145 : vector<8x128xf32>
    %cst_86 = arith.constant 5.000000e-01 : f32
    %147 = vector.broadcast %cst_86 : f32 to vector<8x128xf32>
    %148 = arith.mulf %147, %146 : vector<8x128xf32>
    %cst_87 = arith.constant 5.000000e-01 : f32
    %149 = vector.broadcast %cst_87 : f32 to vector<8x128xf32>
    %150 = arith.addf %148, %149 : vector<8x128xf32>
    %151 = vector.extract_strided_slice %142 {offsets = [0, 128], sizes = [8, 128], strides = [1, 1]} : vector<8x512xf32> to vector<8x128xf32>
    %cst_88 = arith.constant 5.000000e-01 : f32
    %152 = vector.broadcast %cst_88 : f32 to vector<8x128xf32>
    %153 = arith.mulf %152, %151 : vector<8x128xf32>
    %154 = math.tanh %153 : vector<8x128xf32>
    %cst_89 = arith.constant 5.000000e-01 : f32
    %155 = vector.broadcast %cst_89 : f32 to vector<8x128xf32>
    %156 = arith.mulf %155, %154 : vector<8x128xf32>
    %cst_90 = arith.constant 5.000000e-01 : f32
    %157 = vector.broadcast %cst_90 : f32 to vector<8x128xf32>
    %158 = arith.addf %156, %157 : vector<8x128xf32>
    %159 = vector.extract_strided_slice %142 {offsets = [0, 256], sizes = [8, 128], strides = [1, 1]} : vector<8x512xf32> to vector<8x128xf32>
    %160 = math.tanh %159 : vector<8x128xf32>
    %161 = vector.extract_strided_slice %142 {offsets = [0, 384], sizes = [8, 128], strides = [1, 1]} : vector<8x512xf32> to vector<8x128xf32>
    %cst_91 = arith.constant 5.000000e-01 : f32
    %162 = vector.broadcast %cst_91 : f32 to vector<8x128xf32>
    %163 = arith.mulf %162, %161 : vector<8x128xf32>
    %164 = math.tanh %163 : vector<8x128xf32>
    %cst_92 = arith.constant 5.000000e-01 : f32
    %165 = vector.broadcast %cst_92 : f32 to vector<8x128xf32>
    %166 = arith.mulf %165, %164 : vector<8x128xf32>
    %cst_93 = arith.constant 5.000000e-01 : f32
    %167 = vector.broadcast %cst_93 : f32 to vector<8x128xf32>
    %168 = arith.addf %166, %167 : vector<8x128xf32>
    %169 = arith.mulf %158, %136 : vector<8x128xf32>
    %170 = arith.mulf %150, %160 : vector<8x128xf32>
    %171 = arith.addf %169, %170 : vector<8x128xf32>
    %172 = math.tanh %171 : vector<8x128xf32>
    %173 = arith.mulf %168, %172 : vector<8x128xf32>
    %c3_94 = arith.constant 3 : index
    %c0_95 = arith.constant 0 : index
    %c0_96 = arith.constant 0 : index
    %174 = vector.load %arg14[%c3_94, %c0_95, %c0_96] : memref<8x8x512xf32, #tpu.memory_space<vmem>>, vector<1x8x512xf32>
    %175 = vector.shape_cast %174 : vector<1x8x512xf32> to vector<8x512xf32>
    %cst_97 = arith.constant dense<0.000000e+00> : vector<8x512xf32>
    %176 = tpu.matmul %173, %66, %cst_97 {dimension_numbers = #tpu.dot_dimension_numbers<[1], [0], [0], [1], [0, 0, 1, 1], [], []>} : vector<8x128xf32>, vector<128x512xf32>, vector<8x512xf32> -> vector<8x512xf32>
    %177 = arith.addf %175, %176 : vector<8x512xf32>
    %178 = vector.extract_strided_slice %177 {offsets = [0, 0], sizes = [8, 128], strides = [1, 1]} : vector<8x512xf32> to vector<8x128xf32>
    %cst_98 = arith.constant 5.000000e-01 : f32
    %179 = vector.broadcast %cst_98 : f32 to vector<8x128xf32>
    %180 = arith.mulf %179, %178 : vector<8x128xf32>
    %181 = math.tanh %180 : vector<8x128xf32>
    %cst_99 = arith.constant 5.000000e-01 : f32
    %182 = vector.broadcast %cst_99 : f32 to vector<8x128xf32>
    %183 = arith.mulf %182, %181 : vector<8x128xf32>
    %cst_100 = arith.constant 5.000000e-01 : f32
    %184 = vector.broadcast %cst_100 : f32 to vector<8x128xf32>
    %185 = arith.addf %183, %184 : vector<8x128xf32>
    %186 = vector.extract_strided_slice %177 {offsets = [0, 128], sizes = [8, 128], strides = [1, 1]} : vector<8x512xf32> to vector<8x128xf32>
    %cst_101 = arith.constant 5.000000e-01 : f32
    %187 = vector.broadcast %cst_101 : f32 to vector<8x128xf32>
    %188 = arith.mulf %187, %186 : vector<8x128xf32>
    %189 = math.tanh %188 : vector<8x128xf32>
    %cst_102 = arith.constant 5.000000e-01 : f32
    %190 = vector.broadcast %cst_102 : f32 to vector<8x128xf32>
    %191 = arith.mulf %190, %189 : vector<8x128xf32>
    %cst_103 = arith.constant 5.000000e-01 : f32
    %192 = vector.broadcast %cst_103 : f32 to vector<8x128xf32>
    %193 = arith.addf %191, %192 : vector<8x128xf32>
    %194 = vector.extract_strided_slice %177 {offsets = [0, 256], sizes = [8, 128], strides = [1, 1]} : vector<8x512xf32> to vector<8x128xf32>
    %195 = math.tanh %194 : vector<8x128xf32>
    %196 = vector.extract_strided_slice %177 {offsets = [0, 384], sizes = [8, 128], strides = [1, 1]} : vector<8x512xf32> to vector<8x128xf32>
    %cst_104 = arith.constant 5.000000e-01 : f32
    %197 = vector.broadcast %cst_104 : f32 to vector<8x128xf32>
    %198 = arith.mulf %197, %196 : vector<8x128xf32>
    %199 = math.tanh %198 : vector<8x128xf32>
    %cst_105 = arith.constant 5.000000e-01 : f32
    %200 = vector.broadcast %cst_105 : f32 to vector<8x128xf32>
    %201 = arith.mulf %200, %199 : vector<8x128xf32>
    %cst_106 = arith.constant 5.000000e-01 : f32
    %202 = vector.broadcast %cst_106 : f32 to vector<8x128xf32>
    %203 = arith.addf %201, %202 : vector<8x128xf32>
    %204 = arith.mulf %193, %171 : vector<8x128xf32>
    %205 = arith.mulf %185, %195 : vector<8x128xf32>
    %206 = arith.addf %204, %205 : vector<8x128xf32>
    %207 = math.tanh %206 : vector<8x128xf32>
    %208 = arith.mulf %203, %207 : vector<8x128xf32>
    %c4_107 = arith.constant 4 : index
    %c0_108 = arith.constant 0 : index
    %c0_109 = arith.constant 0 : index
    %209 = vector.load %arg14[%c4_107, %c0_108, %c0_109] : memref<8x8x512xf32, #tpu.memory_space<vmem>>, vector<1x8x512xf32>
    %210 = vector.shape_cast %209 : vector<1x8x512xf32> to vector<8x512xf32>
    %cst_110 = arith.constant dense<0.000000e+00> : vector<8x512xf32>
    %211 = tpu.matmul %208, %66, %cst_110 {dimension_numbers = #tpu.dot_dimension_numbers<[1], [0], [0], [1], [0, 0, 1, 1], [], []>} : vector<8x128xf32>, vector<128x512xf32>, vector<8x512xf32> -> vector<8x512xf32>
    %212 = arith.addf %210, %211 : vector<8x512xf32>
    %213 = vector.extract_strided_slice %212 {offsets = [0, 0], sizes = [8, 128], strides = [1, 1]} : vector<8x512xf32> to vector<8x128xf32>
    %cst_111 = arith.constant 5.000000e-01 : f32
    %214 = vector.broadcast %cst_111 : f32 to vector<8x128xf32>
    %215 = arith.mulf %214, %213 : vector<8x128xf32>
    %216 = math.tanh %215 : vector<8x128xf32>
    %cst_112 = arith.constant 5.000000e-01 : f32
    %217 = vector.broadcast %cst_112 : f32 to vector<8x128xf32>
    %218 = arith.mulf %217, %216 : vector<8x128xf32>
    %cst_113 = arith.constant 5.000000e-01 : f32
    %219 = vector.broadcast %cst_113 : f32 to vector<8x128xf32>
    %220 = arith.addf %218, %219 : vector<8x128xf32>
    %221 = vector.extract_strided_slice %212 {offsets = [0, 128], sizes = [8, 128], strides = [1, 1]} : vector<8x512xf32> to vector<8x128xf32>
    %cst_114 = arith.constant 5.000000e-01 : f32
    %222 = vector.broadcast %cst_114 : f32 to vector<8x128xf32>
    %223 = arith.mulf %222, %221 : vector<8x128xf32>
    %224 = math.tanh %223 : vector<8x128xf32>
    %cst_115 = arith.constant 5.000000e-01 : f32
    %225 = vector.broadcast %cst_115 : f32 to vector<8x128xf32>
    %226 = arith.mulf %225, %224 : vector<8x128xf32>
    %cst_116 = arith.constant 5.000000e-01 : f32
    %227 = vector.broadcast %cst_116 : f32 to vector<8x128xf32>
    %228 = arith.addf %226, %227 : vector<8x128xf32>
    %229 = vector.extract_strided_slice %212 {offsets = [0, 256], sizes = [8, 128], strides = [1, 1]} : vector<8x512xf32> to vector<8x128xf32>
    %230 = math.tanh %229 : vector<8x128xf32>
    %231 = vector.extract_strided_slice %212 {offsets = [0, 384], sizes = [8, 128], strides = [1, 1]} : vector<8x512xf32> to vector<8x128xf32>
    %cst_117 = arith.constant 5.000000e-01 : f32
    %232 = vector.broadcast %cst_117 : f32 to vector<8x128xf32>
    %233 = arith.mulf %232, %231 : vector<8x128xf32>
    %234 = math.tanh %233 : vector<8x128xf32>
    %cst_118 = arith.constant 5.000000e-01 : f32
    %235 = vector.broadcast %cst_118 : f32 to vector<8x128xf32>
    %236 = arith.mulf %235, %234 : vector<8x128xf32>
    %cst_119 = arith.constant 5.000000e-01 : f32
    %237 = vector.broadcast %cst_119 : f32 to vector<8x128xf32>
    %238 = arith.addf %236, %237 : vector<8x128xf32>
    %239 = arith.mulf %228, %206 : vector<8x128xf32>
    %240 = arith.mulf %220, %230 : vector<8x128xf32>
    %241 = arith.addf %239, %240 : vector<8x128xf32>
    %242 = math.tanh %241 : vector<8x128xf32>
    %243 = arith.mulf %238, %242 : vector<8x128xf32>
    %c5_120 = arith.constant 5 : index
    %c0_121 = arith.constant 0 : index
    %c0_122 = arith.constant 0 : index
    %244 = vector.load %arg14[%c5_120, %c0_121, %c0_122] : memref<8x8x512xf32, #tpu.memory_space<vmem>>, vector<1x8x512xf32>
    %245 = vector.shape_cast %244 : vector<1x8x512xf32> to vector<8x512xf32>
    %cst_123 = arith.constant dense<0.000000e+00> : vector<8x512xf32>
    %246 = tpu.matmul %243, %66, %cst_123 {dimension_numbers = #tpu.dot_dimension_numbers<[1], [0], [0], [1], [0, 0, 1, 1], [], []>} : vector<8x128xf32>, vector<128x512xf32>, vector<8x512xf32> -> vector<8x512xf32>
    %247 = arith.addf %245, %246 : vector<8x512xf32>
    %248 = vector.extract_strided_slice %247 {offsets = [0, 0], sizes = [8, 128], strides = [1, 1]} : vector<8x512xf32> to vector<8x128xf32>
    %cst_124 = arith.constant 5.000000e-01 : f32
    %249 = vector.broadcast %cst_124 : f32 to vector<8x128xf32>
    %250 = arith.mulf %249, %248 : vector<8x128xf32>
    %251 = math.tanh %250 : vector<8x128xf32>
    %cst_125 = arith.constant 5.000000e-01 : f32
    %252 = vector.broadcast %cst_125 : f32 to vector<8x128xf32>
    %253 = arith.mulf %252, %251 : vector<8x128xf32>
    %cst_126 = arith.constant 5.000000e-01 : f32
    %254 = vector.broadcast %cst_126 : f32 to vector<8x128xf32>
    %255 = arith.addf %253, %254 : vector<8x128xf32>
    %256 = vector.extract_strided_slice %247 {offsets = [0, 128], sizes = [8, 128], strides = [1, 1]} : vector<8x512xf32> to vector<8x128xf32>
    %cst_127 = arith.constant 5.000000e-01 : f32
    %257 = vector.broadcast %cst_127 : f32 to vector<8x128xf32>
    %258 = arith.mulf %257, %256 : vector<8x128xf32>
    %259 = math.tanh %258 : vector<8x128xf32>
    %cst_128 = arith.constant 5.000000e-01 : f32
    %260 = vector.broadcast %cst_128 : f32 to vector<8x128xf32>
    %261 = arith.mulf %260, %259 : vector<8x128xf32>
    %cst_129 = arith.constant 5.000000e-01 : f32
    %262 = vector.broadcast %cst_129 : f32 to vector<8x128xf32>
    %263 = arith.addf %261, %262 : vector<8x128xf32>
    %264 = vector.extract_strided_slice %247 {offsets = [0, 256], sizes = [8, 128], strides = [1, 1]} : vector<8x512xf32> to vector<8x128xf32>
    %265 = math.tanh %264 : vector<8x128xf32>
    %266 = vector.extract_strided_slice %247 {offsets = [0, 384], sizes = [8, 128], strides = [1, 1]} : vector<8x512xf32> to vector<8x128xf32>
    %cst_130 = arith.constant 5.000000e-01 : f32
    %267 = vector.broadcast %cst_130 : f32 to vector<8x128xf32>
    %268 = arith.mulf %267, %266 : vector<8x128xf32>
    %269 = math.tanh %268 : vector<8x128xf32>
    %cst_131 = arith.constant 5.000000e-01 : f32
    %270 = vector.broadcast %cst_131 : f32 to vector<8x128xf32>
    %271 = arith.mulf %270, %269 : vector<8x128xf32>
    %cst_132 = arith.constant 5.000000e-01 : f32
    %272 = vector.broadcast %cst_132 : f32 to vector<8x128xf32>
    %273 = arith.addf %271, %272 : vector<8x128xf32>
    %274 = arith.mulf %263, %241 : vector<8x128xf32>
    %275 = arith.mulf %255, %265 : vector<8x128xf32>
    %276 = arith.addf %274, %275 : vector<8x128xf32>
    %277 = math.tanh %276 : vector<8x128xf32>
    %278 = arith.mulf %273, %277 : vector<8x128xf32>
    %c6_133 = arith.constant 6 : index
    %c0_134 = arith.constant 0 : index
    %c0_135 = arith.constant 0 : index
    %279 = vector.load %arg14[%c6_133, %c0_134, %c0_135] : memref<8x8x512xf32, #tpu.memory_space<vmem>>, vector<1x8x512xf32>
    %280 = vector.shape_cast %279 : vector<1x8x512xf32> to vector<8x512xf32>
    %cst_136 = arith.constant dense<0.000000e+00> : vector<8x512xf32>
    %281 = tpu.matmul %278, %66, %cst_136 {dimension_numbers = #tpu.dot_dimension_numbers<[1], [0], [0], [1], [0, 0, 1, 1], [], []>} : vector<8x128xf32>, vector<128x512xf32>, vector<8x512xf32> -> vector<8x512xf32>
    %282 = arith.addf %280, %281 : vector<8x512xf32>
    %283 = vector.extract_strided_slice %282 {offsets = [0, 0], sizes = [8, 128], strides = [1, 1]} : vector<8x512xf32> to vector<8x128xf32>
    %cst_137 = arith.constant 5.000000e-01 : f32
    %284 = vector.broadcast %cst_137 : f32 to vector<8x128xf32>
    %285 = arith.mulf %284, %283 : vector<8x128xf32>
    %286 = math.tanh %285 : vector<8x128xf32>
    %cst_138 = arith.constant 5.000000e-01 : f32
    %287 = vector.broadcast %cst_138 : f32 to vector<8x128xf32>
    %288 = arith.mulf %287, %286 : vector<8x128xf32>
    %cst_139 = arith.constant 5.000000e-01 : f32
    %289 = vector.broadcast %cst_139 : f32 to vector<8x128xf32>
    %290 = arith.addf %288, %289 : vector<8x128xf32>
    %291 = vector.extract_strided_slice %282 {offsets = [0, 128], sizes = [8, 128], strides = [1, 1]} : vector<8x512xf32> to vector<8x128xf32>
    %cst_140 = arith.constant 5.000000e-01 : f32
    %292 = vector.broadcast %cst_140 : f32 to vector<8x128xf32>
    %293 = arith.mulf %292, %291 : vector<8x128xf32>
    %294 = math.tanh %293 : vector<8x128xf32>
    %cst_141 = arith.constant 5.000000e-01 : f32
    %295 = vector.broadcast %cst_141 : f32 to vector<8x128xf32>
    %296 = arith.mulf %295, %294 : vector<8x128xf32>
    %cst_142 = arith.constant 5.000000e-01 : f32
    %297 = vector.broadcast %cst_142 : f32 to vector<8x128xf32>
    %298 = arith.addf %296, %297 : vector<8x128xf32>
    %299 = vector.extract_strided_slice %282 {offsets = [0, 256], sizes = [8, 128], strides = [1, 1]} : vector<8x512xf32> to vector<8x128xf32>
    %300 = math.tanh %299 : vector<8x128xf32>
    %301 = vector.extract_strided_slice %282 {offsets = [0, 384], sizes = [8, 128], strides = [1, 1]} : vector<8x512xf32> to vector<8x128xf32>
    %cst_143 = arith.constant 5.000000e-01 : f32
    %302 = vector.broadcast %cst_143 : f32 to vector<8x128xf32>
    %303 = arith.mulf %302, %301 : vector<8x128xf32>
    %304 = math.tanh %303 : vector<8x128xf32>
    %cst_144 = arith.constant 5.000000e-01 : f32
    %305 = vector.broadcast %cst_144 : f32 to vector<8x128xf32>
    %306 = arith.mulf %305, %304 : vector<8x128xf32>
    %cst_145 = arith.constant 5.000000e-01 : f32
    %307 = vector.broadcast %cst_145 : f32 to vector<8x128xf32>
    %308 = arith.addf %306, %307 : vector<8x128xf32>
    %309 = arith.mulf %298, %276 : vector<8x128xf32>
    %310 = arith.mulf %290, %300 : vector<8x128xf32>
    %311 = arith.addf %309, %310 : vector<8x128xf32>
    %312 = math.tanh %311 : vector<8x128xf32>
    %313 = arith.mulf %308, %312 : vector<8x128xf32>
    %c7_146 = arith.constant 7 : index
    %c0_147 = arith.constant 0 : index
    %c0_148 = arith.constant 0 : index
    %314 = vector.load %arg14[%c7_146, %c0_147, %c0_148] : memref<8x8x512xf32, #tpu.memory_space<vmem>>, vector<1x8x512xf32>
    %315 = vector.shape_cast %314 : vector<1x8x512xf32> to vector<8x512xf32>
    %cst_149 = arith.constant dense<0.000000e+00> : vector<8x512xf32>
    %316 = tpu.matmul %313, %66, %cst_149 {dimension_numbers = #tpu.dot_dimension_numbers<[1], [0], [0], [1], [0, 0, 1, 1], [], []>} : vector<8x128xf32>, vector<128x512xf32>, vector<8x512xf32> -> vector<8x512xf32>
    %317 = arith.addf %315, %316 : vector<8x512xf32>
    %318 = vector.extract_strided_slice %317 {offsets = [0, 0], sizes = [8, 128], strides = [1, 1]} : vector<8x512xf32> to vector<8x128xf32>
    %cst_150 = arith.constant 5.000000e-01 : f32
    %319 = vector.broadcast %cst_150 : f32 to vector<8x128xf32>
    %320 = arith.mulf %319, %318 : vector<8x128xf32>
    %321 = math.tanh %320 : vector<8x128xf32>
    %cst_151 = arith.constant 5.000000e-01 : f32
    %322 = vector.broadcast %cst_151 : f32 to vector<8x128xf32>
    %323 = arith.mulf %322, %321 : vector<8x128xf32>
    %cst_152 = arith.constant 5.000000e-01 : f32
    %324 = vector.broadcast %cst_152 : f32 to vector<8x128xf32>
    %325 = arith.addf %323, %324 : vector<8x128xf32>
    %326 = vector.extract_strided_slice %317 {offsets = [0, 128], sizes = [8, 128], strides = [1, 1]} : vector<8x512xf32> to vector<8x128xf32>
    %cst_153 = arith.constant 5.000000e-01 : f32
    %327 = vector.broadcast %cst_153 : f32 to vector<8x128xf32>
    %328 = arith.mulf %327, %326 : vector<8x128xf32>
    %329 = math.tanh %328 : vector<8x128xf32>
    %cst_154 = arith.constant 5.000000e-01 : f32
    %330 = vector.broadcast %cst_154 : f32 to vector<8x128xf32>
    %331 = arith.mulf %330, %329 : vector<8x128xf32>
    %cst_155 = arith.constant 5.000000e-01 : f32
    %332 = vector.broadcast %cst_155 : f32 to vector<8x128xf32>
    %333 = arith.addf %331, %332 : vector<8x128xf32>
    %334 = vector.extract_strided_slice %317 {offsets = [0, 256], sizes = [8, 128], strides = [1, 1]} : vector<8x512xf32> to vector<8x128xf32>
    %335 = math.tanh %334 : vector<8x128xf32>
    %336 = vector.extract_strided_slice %317 {offsets = [0, 384], sizes = [8, 128], strides = [1, 1]} : vector<8x512xf32> to vector<8x128xf32>
    %cst_156 = arith.constant 5.000000e-01 : f32
    %337 = vector.broadcast %cst_156 : f32 to vector<8x128xf32>
    %338 = arith.mulf %337, %336 : vector<8x128xf32>
    %339 = math.tanh %338 : vector<8x128xf32>
    %cst_157 = arith.constant 5.000000e-01 : f32
    %340 = vector.broadcast %cst_157 : f32 to vector<8x128xf32>
    %341 = arith.mulf %340, %339 : vector<8x128xf32>
    %cst_158 = arith.constant 5.000000e-01 : f32
    %342 = vector.broadcast %cst_158 : f32 to vector<8x128xf32>
    %343 = arith.addf %341, %342 : vector<8x128xf32>
    %344 = arith.mulf %333, %311 : vector<8x128xf32>
    %345 = arith.mulf %325, %335 : vector<8x128xf32>
    %346 = arith.addf %344, %345 : vector<8x128xf32>
    %347 = math.tanh %346 : vector<8x128xf32>
    %348 = arith.mulf %343, %347 : vector<8x128xf32>
    %c0_159 = arith.constant 0 : index
    %c0_160 = arith.constant 0 : index
    %349 = vector.load %arg5[%c0_159, %c0_160] : memref<128x30xf32, #tpu.memory_space<vmem>>, vector<128x30xf32>
    %cst_161 = arith.constant dense<0.000000e+00> : vector<8x30xf32>
    %350 = tpu.matmul %348, %349, %cst_161 {dimension_numbers = #tpu.dot_dimension_numbers<[1], [0], [0], [1], [0, 0, 1, 1], [], []>} : vector<8x128xf32>, vector<128x30xf32>, vector<8x30xf32> -> vector<8x30xf32>
    %c0_162 = arith.constant 0 : index
    %c0_163 = arith.constant 0 : index
    %351 = vector.load %arg6[%c0_162, %c0_163] : memref<1x30xf32, #tpu.memory_space<vmem>>, vector<1x30xf32>
    %352 = vector.broadcast %351 : vector<1x30xf32> to vector<8x30xf32>
    %353 = arith.addf %350, %352 : vector<8x30xf32>
    %354 = math.tanh %353 : vector<8x30xf32>
    %c0_164 = arith.constant 0 : index
    %c0_165 = arith.constant 0 : index
    %355 = vector.load %arg7[%c0_164, %c0_165] : memref<30x30xf32, #tpu.memory_space<vmem>>, vector<30x30xf32>
    %cst_166 = arith.constant dense<0.000000e+00> : vector<8x30xf32>
    %356 = tpu.matmul %354, %355, %cst_166 {dimension_numbers = #tpu.dot_dimension_numbers<[1], [0], [0], [1], [0, 0, 1, 1], [], []>} : vector<8x30xf32>, vector<30x30xf32>, vector<8x30xf32> -> vector<8x30xf32>
    %c0_167 = arith.constant 0 : index
    %c0_168 = arith.constant 0 : index
    %357 = vector.load %arg8[%c0_167, %c0_168] : memref<1x30xf32, #tpu.memory_space<vmem>>, vector<1x30xf32>
    %358 = vector.broadcast %357 : vector<1x30xf32> to vector<8x30xf32>
    %359 = arith.addf %356, %358 : vector<8x30xf32>
    %360 = math.tanh %359 : vector<8x30xf32>
    %c0_169 = arith.constant 0 : index
    %c0_170 = arith.constant 0 : index
    %361 = vector.load %arg9[%c0_169, %c0_170] : memref<30x30xf32, #tpu.memory_space<vmem>>, vector<30x30xf32>
    %cst_171 = arith.constant dense<0.000000e+00> : vector<8x30xf32>
    %362 = tpu.matmul %360, %361, %cst_171 {dimension_numbers = #tpu.dot_dimension_numbers<[1], [0], [0], [1], [0, 0, 1, 1], [], []>} : vector<8x30xf32>, vector<30x30xf32>, vector<8x30xf32> -> vector<8x30xf32>
    %c0_172 = arith.constant 0 : index
    %c0_173 = arith.constant 0 : index
    %363 = vector.load %arg10[%c0_172, %c0_173] : memref<1x30xf32, #tpu.memory_space<vmem>>, vector<1x30xf32>
    %364 = vector.broadcast %363 : vector<1x30xf32> to vector<8x30xf32>
    %365 = arith.addf %362, %364 : vector<8x30xf32>
    %366 = math.tanh %365 : vector<8x30xf32>
    %c0_174 = arith.constant 0 : index
    %c0_175 = arith.constant 0 : index
    %367 = vector.load %arg11[%c0_174, %c0_175] : memref<1x30xf32, #tpu.memory_space<vmem>>, vector<1x30xf32>
    %368 = vector.broadcast %367 : vector<1x30xf32> to vector<8x30xf32>
    %369 = arith.mulf %366, %368 : vector<8x30xf32>
    %cst_176 = arith.constant dense<0.000000e+00> : vector<8xf32>
    %370 = vector.multi_reduction <add>, %369, %cst_176 [1] : vector<8x30xf32> to vector<8xf32>
    %371 = vector.shape_cast %370 : vector<8xf32> to vector<8x1xf32>
    %c0_177 = arith.constant 0 : index
    %c0_178 = arith.constant 0 : index
    %372 = vector.load %arg12[%c0_177, %c0_178] : memref<1x1xf32, #tpu.memory_space<vmem>>, vector<1x1xf32>
    %373 = vector.broadcast %372 : vector<1x1xf32> to vector<8x1xf32>
    %374 = arith.addf %371, %373 : vector<8x1xf32>
    %c0_179 = arith.constant 0 : index
    %c0_180 = arith.constant 0 : index
    %375 = vector.load %arg13[%c0_179, %c0_180] : memref<8x1xf32, #tpu.memory_space<vmem>>, vector<8x1xf32>
    tpu.vector_store %arg13[%c0_179, %c0_180], %374 {strides = array<i32>} : memref<8x1xf32, #tpu.memory_space<vmem>>, vector<8x1xf32>,
    return
  }
  func.func @transform_0(%arg0: i32) -> (i32, i32, i32) {
    %c0_i32 = arith.constant 0 : i32
    %c0_i32_0 = arith.constant 0 : i32
    %c0_i32_1 = arith.constant 0 : i32
    return %c0_i32, %arg0, %c0_i32_0 : i32, i32, i32
  }
  func.func @transform_1(%arg0: i32) -> (i32, i32) {
    %c0_i32 = arith.constant 0 : i32
    %c0_i32_0 = arith.constant 0 : i32
    %c0_i32_1 = arith.constant 0 : i32
    return %c0_i32, %c0_i32_0 : i32, i32
  }
  func.func @transform_2(%arg0: i32) -> (i32, i32) {
    %c0_i32 = arith.constant 0 : i32
    %c0_i32_0 = arith.constant 0 : i32
    %c0_i32_1 = arith.constant 0 : i32
    return %c0_i32, %c0_i32_0 : i32, i32
  }
  func.func @transform_3(%arg0: i32) -> (i32, i32) {
    %c0_i32 = arith.constant 0 : i32
    %c0_i32_0 = arith.constant 0 : i32
    %c0_i32_1 = arith.constant 0 : i32
    return %c0_i32, %c0_i32_0 : i32, i32
  }
  func.func @transform_4(%arg0: i32) -> (i32, i32) {
    %c0_i32 = arith.constant 0 : i32
    %c0_i32_0 = arith.constant 0 : i32
    %c0_i32_1 = arith.constant 0 : i32
    return %c0_i32, %c0_i32_0 : i32, i32
  }
  func.func @transform_5(%arg0: i32) -> (i32, i32) {
    %c0_i32 = arith.constant 0 : i32
    %c0_i32_0 = arith.constant 0 : i32
    %c0_i32_1 = arith.constant 0 : i32
    return %c0_i32, %c0_i32_0 : i32, i32
  }
  func.func @transform_6(%arg0: i32) -> (i32, i32) {
    %c0_i32 = arith.constant 0 : i32
    %c0_i32_0 = arith.constant 0 : i32
    %c0_i32_1 = arith.constant 0 : i32
    return %c0_i32, %c0_i32_0 : i32, i32
  }
  func.func @transform_7(%arg0: i32) -> (i32, i32) {
    %c0_i32 = arith.constant 0 : i32
    %c0_i32_0 = arith.constant 0 : i32
    %c0_i32_1 = arith.constant 0 : i32
    return %c0_i32, %c0_i32_0 : i32, i32
  }
  func.func @transform_8(%arg0: i32) -> (i32, i32) {
    %c0_i32 = arith.constant 0 : i32
    %c0_i32_0 = arith.constant 0 : i32
    %c0_i32_1 = arith.constant 0 : i32
    return %c0_i32, %c0_i32_0 : i32, i32
  }
  func.func @transform_9(%arg0: i32) -> (i32, i32) {
    %c0_i32 = arith.constant 0 : i32
    %c0_i32_0 = arith.constant 0 : i32
    %c0_i32_1 = arith.constant 0 : i32
    return %c0_i32, %c0_i32_0 : i32, i32
  }
  func.func @transform_10(%arg0: i32) -> (i32, i32) {
    %c0_i32 = arith.constant 0 : i32
    %c0_i32_0 = arith.constant 0 : i32
    %c0_i32_1 = arith.constant 0 : i32
    return %c0_i32, %c0_i32_0 : i32, i32
  }
  func.func @transform_11(%arg0: i32) -> (i32, i32) {
    %c0_i32 = arith.constant 0 : i32
    %c0_i32_0 = arith.constant 0 : i32
    %c0_i32_1 = arith.constant 0 : i32
    return %c0_i32, %c0_i32_0 : i32, i32
  }
  func.func @transform_12(%arg0: i32) -> (i32, i32) {
    %c0_i32 = arith.constant 0 : i32
    %c0_i32_0 = arith.constant 0 : i32
    return %arg0, %c0_i32 : i32, i32
  }
}

</mosaic_0001>

<bundles_post_ra>
// kernel: tpu_custom_call.1
= control target key start
LH: loop header
LB: loop body
LE: loop exit
PB: predicated region body
PF: predicated region fallthrough
CT: control target
= control target key end

     0   :  { %s4650_s0 = inlined_call_operand.vmem [shape: f32[8,8,3], index: 0, kind: input, shape index: {}]   ;;  %s4651_s1 = inlined_call_operand.vmem [shape: f32[3,512], index: 1, kind: input, shape index: {}]   ;;  %s4652_s2 = inlined_call_operand.hbm [shape: f32[128,512], index: 2, kind: input, shape index: {}]   ;;  %s4653_s3 = inlined_call_operand.vmem [shape: f32[1,512], index: 3, kind: input, shape index: {}]   ;;  %s4654_s4 = inlined_call_operand.vmem [shape: f32[128,30], index: 4, kind: input, shape index: {}]   ;;  %s4655_s5 = inlined_call_operand.vmem [shape: f32[1,30], index: 5, kind: input, shape index: {}]   ;;  %s4656_s6 = inlined_call_operand.vmem [shape: f32[30,30], index: 6, kind: input, shape index: {}]   ;;  %s4657_s7 = inlined_call_operand.vmem [shape: f32[1,30], index: 7, kind: input, shape index: {}]   ;;  %s4658_s8 = inlined_call_operand.vmem [shape: f32[30,30], index: 8, kind: input, shape index: {}]   ;;  %s4659_s9 = inlined_call_operand.vmem [shape: f32[1,30], index: 9, kind: input, shape index: {}]   ;;  %s4660_s10 = inlined_call_operand.vmem [shape: f32[1,30], index: 10, kind: input, shape index: {}]   ;;  %s4661_s11 = inlined_call_operand.<no memory space> [shape: f32[1,1], index: 11, kind: input, shape index: {}]   ;;  %s4662_s12 = inlined_call_operand.vmem [shape: f32[8,1], index: 12, kind: output, shape index: {}]  }
   0x1   :  { %v17_v0 = vstv %s4661_s11 }
   0x2   :  { %18 = vst [vmem:[#allocation3] sm:$0x1] %v17_v0 }
   0x3   :  { %19 = vsyncpa [#allocation5], 0  ;;  %s3896_s23 = smov [#allocation4]   ;;  %s3872_s27 = scalar_lea.hbm %s4652_s2, 8192 }
   0x4   :  { %s29_s24 = sshll.u32 %s3896_s23, 4  ;;  %p3873_p0 = scmp.ne.s32.totalorder %s4652_s2, %s3872_s27  ;;  %s30_s24 = int_to_ptr.vmem [resolvable:$true] %s29_s24 }
   0x5   :  { %p3876_p1 = scmp.lt.u32.totalorder %s3872_s27, %s4652_s2 }
   0x7   :  { %p3878_p2 = pnand %p3876_p1, %p3873_p0 }
   0x9   :  { %3881 = shalt.err (!%p3878_p2)
}
   0xa   :  { %s3882_s11 = scalar_lea.vmem %s30_s24, 8192  ;;  %p3887_p4 = scmp.lt.s32.totalorder %s30_s24, %s30_s24 }
   0xb   :  { %p3883_p3 = scmp.ne.s32.totalorder %s30_s24, %s3882_s11  ;;  %p3888_p5 = scmp.lt.s32.totalorder %s3882_s11, %s3882_s11 }
   0xd   :  { %p3889_p6 = por %p3888_p5, %p3887_p4 }
   0xf   :  { %p3890_p7 = pnand %p3889_p6, %p3883_p3 }
  0x11   :  { %3893 = shalt.err (!%p3890_p7)
}
  0x12   :  { %s3897_s14 = smov 512   ;;  %s3898_s15 = smov 32  }
  0x13   :  { %35 = dma.hbm_to_vmem [thread:$0]  %s4652_s2, 8192, %s30_s24, [#allocation5], %s3897_s14, %s3897_s14, %s3898_s15  }
  0x14   :  { %3894 = dma.done.wait [#allocation5], 8192  }
  0x15   :  { %3895 = vsyncadd [#allocation5], 4294959104  ;;  %v3899_v1 = vmov 0.0   ;;  %v3988_v2 = vld [vmem:[%s4651_s1] sm:$0x77]  ;;  %vm90_vm0 = vcmask 1042432  }
  0x16   :  { %163 = vmatprep.mubr.f32.mxu1 %v3899_v1  ;;  %466 = vmatprep.mubr.f32.mxu0 %v3899_v1  ;;  %v3993_v3 = vld [vmem:[%s4651_s1 + $0x8] sm:$0x77]  ;;  %v84_v4 = vcombine.high %v3988_v2, %v3988_v2  ;;  %v60_v6 = vld [vmem:[%s4650_s0] sm:$0xff]  ;;  %vm86_vm1 = vcmask 23552   ;;  %v3028_v7 = vld [vmem:[%s4650_s0 + $0x10] sm:$0xff]  ;;  %vm3901_vm2 = vmmov 0  }
  0x17   :  { %v3999_v5 = vcombine.high %v3993_v3, %v3993_v3  ;;  %v3035_v8 = vld [vmem:[%s4650_s0 + $0x18] sm:$0xff]  ;;  %v3021_v9 = vld [vmem:[%s4650_s0 + $0x8] sm:$0xff]  ;;  %v3042_v10 = vld [vmem:[%s4650_s0 + $0x20] sm:$0xff]  ;;  %vm2826_vm3 = vcmask 1045504   ;;  %vm3902_vm4 = vmmov 1   ;;  %vm2822_vm6 = vcmask 244736  }
  0x18   :  { %3015 = vmatprep.subr.msk.mxu1 %vm90_vm0, %v84_v4  ;;  %3029 = vmatprep.subr.msk.mxu0 %vm90_vm0, %v84_v4  ;;  %v3049_v11 = vld [vmem:[%s4650_s0 + $0x28] sm:$0xff]  ;;  %v4068_v14 = vld [vmem:[%s4650_s0 + $0x30] sm:$0xff]  ;;  %v4087_v20 = vld [vmem:[%s4650_s0 + $0x38] sm:$0xff]  ;;  %vm3008_vm7 = vcmask 7168  }
  0x19   :  { %3016 = vmatpush1.msk.msra.mxu1 %vm90_vm0, %v3988_v2  ;;  %3030 = vmatpush1.msk.msra.mxu0 %vm90_vm0, %v3988_v2  ;;  %v1310_v12 = vld [vmem:[#allocation4 + $0x8] sm:$0xff]  ;;  %v1309_v15 = vld [vmem:[#allocation4] sm:$0xff]  ;;  %v1312_v37 = vld [vmem:[#allocation4 + $0x18] sm:$0xff] }
  0x1a   :  { %3017 = vmatmul.mubr.msk.f32.vlgmr.msra.gmra.mrb[0].mxu1 %vm86_vm1, %v60_v6  ;;  %3018 = vmatprep.subr.msk.mxu1 %vm90_vm0, %v3999_v5  ;;  %v1314_v13 = vld [vmem:[#allocation4 + $0x28] sm:$0xff]  ;;  %v1313_v16 = vld [vmem:[#allocation4 + $0x20] sm:$0xff]  ;;  %v1316_v38 = vld [vmem:[#allocation4 + $0x38] sm:$0xff] }
  0x1b   :  { %3031 = vmatmul.mubr.msk.f32.vlgmr.msra.gmra.mrb[0].mxu0 %vm86_vm1, %v3028_v7  ;;  %3019 = vmatpush1.msk.msra.mxu1 %vm90_vm0, %v3993_v3  ;;  %v4076_v17 = vpack.c.bf16 %v1314_v13, %v1310_v12  ;;  %v1318_v18 = vld [vmem:[#allocation4 + $0x48] sm:$0xff]  ;;  %v4089_v21 = vpack.c.bf16 %v1313_v16, %v1309_v15  ;;  %v1317_v23 = vld [vmem:[#allocation4 + $0x40] sm:$0xff]  ;;  %v4135_v42 = vpack.c.bf16 %v1316_v38, %v1312_v37  ;;  %v1311_v44 = vld [vmem:[#allocation4 + $0x10] sm:$0xff] }
  0x1c   :  { %3036 = vmatprep.subr.msk.mxu0 %vm90_vm0, %v84_v4  ;;  %234 = vmatprep.mubr.f32.mxu1 %v3899_v1  ;;  %v1322_v19 = vld [vmem:[#allocation4 + $0x68] sm:$0xff]  ;;  %v1321_v24 = vld [vmem:[#allocation4 + $0x60] sm:$0xff]  ;;  %v1315_v45 = vld [vmem:[#allocation4 + $0x30] sm:$0xff] }
  0x1d   :  { %3037 = vmatpush1.msk.msra.mxu0 %vm90_vm0, %v3988_v2  ;;  %618 = vmatprep.mubr.f32.mxu0 %v3899_v1  ;;  %v4094_v22 = vpack.c.bf16 %v1322_v19, %v1318_v18  ;;  %v1326_v25 = vld [vmem:[#allocation4 + $0x88] sm:$0xff]  ;;  %v4105_v27 = vpack.c.bf16 %v1321_v24, %v1317_v23  ;;  %v1325_v29 = vld [vmem:[#allocation4 + $0x80] sm:$0xff]  ;;  %v1320_v48 = vld [vmem:[#allocation4 + $0x58] sm:$0xff]  ;;  %v4145_v52 = vpack.c.bf16 %v1315_v45, %v1311_v44 }
  0x1e   :  { %3020 = vmatmul.mubr.msk.f32.vlgmr.msra.gmra.mrb[2].mxu1 %vm86_vm1, %v60_v6  ;;  %3022 = vmatprep.subr.msk.mxu1 %vm90_vm0, %v84_v4  ;;  %v1330_v26 = vld [vmem:[#allocation4 + $0xa8] sm:$0xff]  ;;  %v1329_v30 = vld [vmem:[#allocation4 + $0xa0] sm:$0xff]  ;;  %v1324_v49 = vld [vmem:[#allocation4 + $0x78] sm:$0xff] }
  0x1f   :  { %3038 = vmatmul.mubr.msk.f32.vlgmr.msra.gmra.mrb[2].mxu0 %vm86_vm1, %v3035_v8  ;;  %3023 = vmatpush1.msk.msra.mxu1 %vm90_vm0, %v3988_v2  ;;  %v4109_v28 = vpack.c.bf16 %v1330_v26, %v1326_v25  ;;  %v1334_v31 = vld [vmem:[#allocation4 + $0xc8] sm:$0xff]  ;;  %v4120_v33 = vpack.c.bf16 %v1329_v30, %v1325_v29  ;;  %v1333_v34 = vld [vmem:[#allocation4 + $0xc0] sm:$0xff]  ;;  %v4151_v54 = vpack.c.bf16 %v1324_v49, %v1320_v48  ;;  %v1319_v56 = vld [vmem:[#allocation4 + $0x50] sm:$0xff] }
  0x20   :  { %3043 = vmatprep.subr.msk.mxu0 %vm90_vm0, %v84_v4  ;;  %314 = vmatprep.mubr.f32.mxu1 %v3899_v1  ;;  %v1338_v32 = vld [vmem:[#allocation4 + $0xe8] sm:$0xff]  ;;  %v1337_v36 = vld [vmem:[#allocation4 + $0xe0] sm:$0xff]  ;;  %v1323_v57 = vld [vmem:[#allocation4 + $0x70] sm:$0xff] }
  0x21   :  { %3044 = vmatpush1.msk.msra.mxu0 %vm90_vm0, %v3988_v2  ;;  %770 = vmatprep.mubr.f32.mxu0 %v3899_v1  ;;  %v4123_v35 = vpack.c.bf16 %v1338_v32, %v1334_v31  ;;  %v1342_v39 = vld [vmem:[#allocation4 + $0x108] sm:$0xff]  ;;  %v4133_v41 = vpack.c.bf16 %v1337_v36, %v1333_v34  ;;  %v1341_v43 = vld [vmem:[#allocation4 + $0x100] sm:$0xff]  ;;  %v1328_v60 = vld [vmem:[#allocation4 + $0x98] sm:$0xff]  ;;  %v4159_v0 = vpack.c.bf16 %v1323_v57, %v1319_v56 }
  0x22   :  { %3024 = vmatmul.mubr.msk.f32.vlgmr.msra.gmra.mrb[4].mxu1 %vm86_vm1, %v3021_v9  ;;  %3025 = vmatprep.subr.msk.mxu1 %vm90_vm0, %v3999_v5  ;;  %v1346_v40 = vld [vmem:[#allocation4 + $0x128] sm:$0xff]  ;;  %v1345_v47 = vld [vmem:[#allocation4 + $0x120] sm:$0xff]  ;;  %v1332_v61 = vld [vmem:[#allocation4 + $0xb8] sm:$0xff] }
  0x23   :  { %3045 = vmatmul.mubr.msk.f32.vlgmr.msra.gmra.mrb[4].mxu0 %vm86_vm1, %v3042_v10  ;;  %3026 = vmatpush1.msk.msra.mxu1 %vm90_vm0, %v3993_v3  ;;  %v4138_v46 = vpack.c.bf16 %v1346_v40, %v1342_v39  ;;  %v1350_v50 = vld [vmem:[#allocation4 + $0x148] sm:$0xff]  ;;  %v4149_v53 = vpack.c.bf16 %v1345_v47, %v1341_v43  ;;  %v1349_v55 = vld [vmem:[#allocation4 + $0x140] sm:$0xff]  ;;  %v1331_v6 = vld [vmem:[#allocation4 + $0xb0] sm:$0xff] }
  0x24   :  { %3050 = vmatprep.subr.msk.mxu0 %vm90_vm0, %v84_v4  ;;  %385 = vmatprep.mubr.f32.mxu1 %v3899_v1  ;;  %v1354_v51 = vld [vmem:[#allocation4 + $0x168] sm:$0xff]  ;;  %v1353_v59 = vld [vmem:[#allocation4 + $0x160] sm:$0xff]  ;;  %v1335_v18 = vld [vmem:[#allocation4 + $0xd0] sm:$0xff] }
  0x25   :  { %3051 = vmatpush1.msk.msra.mxu0 %vm90_vm0, %v3988_v2  ;;  %922 = vmatprep.mubr.f32.mxu0 %v3899_v1  ;;  %v4154_v58 = vpack.c.bf16 %v1354_v51, %v1350_v50  ;;  %v1358_v62 = vld [vmem:[#allocation4 + $0x188] sm:$0xff]  ;;  %v1365_v16 = vld [vmem:[#allocation4 + $0x1c0] sm:$0xff]  ;;  %v1339_v19 = vld [vmem:[#allocation4 + $0xf0] sm:$0xff] }
  0x26   :  { %3027 = vmatmul.mubr.msk.f32.vlgmr.msra.gmra.mrb[6].mxu1 %vm86_vm1, %v3021_v9  ;;  %3032 = vmatprep.subr.msk.mxu1 %vm90_vm0, %v3999_v5  ;;  %v1362_v63 = vld [vmem:[#allocation4 + $0x1a8] sm:$0xff]  ;;  %v1336_v9 = vld [vmem:[#allocation4 + $0xd8] sm:$0xff]  ;;  %v1369_v23 = vld [vmem:[#allocation4 + $0x1e0] sm:$0xff]  ;;  %v4184_v26 = vpack.c.bf16 %v1339_v19, %v1335_v18 }
  0x27   :  { %3052 = vmatmul.mubr.msk.f32.vlgmr.msra.gmra.mrb[6].mxu0 %vm86_vm1, %v3049_v11  ;;  %3033 = vmatpush1.msk.msra.mxu1 %vm90_vm0, %v3993_v3  ;;  %v1370_v12 = vld [vmem:[#allocation4 + $0x1e8] sm:$0xff]  ;;  %v1344_v24 = vld [vmem:[#allocation4 + $0x118] sm:$0xff]  ;;  %v4188_v29 = vpack.c.bf16 %v1369_v23, %v1365_v16  ;;  %v1343_v31 = vld [vmem:[#allocation4 + $0x110] sm:$0xff] }
  0x28   :  { %3057 = vmatprep.subr.msk.mxu0 %vm90_vm0, %v84_v4  ;;  %537 = vmatprep.mubr.f32.mxu1 %v3899_v1  ;;  %v1348_v25 = vld [vmem:[#allocation4 + $0x138] sm:$0xff]  ;;  %v1347_v32 = vld [vmem:[#allocation4 + $0x130] sm:$0xff]  ;;  %vm4608_vm5 = vmpackc.low %vm2826_vm3, %vm3902_vm4 }
  0x29   :  { %3058 = vmatpush1.msk.msra.mxu0 %vm90_vm0, %v3988_v2  ;;  %1074 = vmatprep.mubr.f32.mxu0 %v3899_v1  ;;  %v4190_v30 = vpack.c.bf16 %v1348_v25, %v1344_v24  ;;  %v1352_v34 = vld [vmem:[#allocation4 + $0x158] sm:$0xff]  ;;  %v4194_v37 = vpack.c.bf16 %v1347_v32, %v1343_v31  ;;  %v1351_v39 = vld [vmem:[#allocation4 + $0x150] sm:$0xff] }
  0x2a   :  { %3034 = vmatmul.mubr.msk.f32.vlgmr.msra.gmra.mrb[8].mxu1 %vm86_vm1, %v3028_v7  ;;  %3039 = vmatprep.subr.msk.mxu1 %vm90_vm0, %v3999_v5  ;;  %v4169_v7 = vpack.c.bf16 %v1362_v63, %v1358_v62  ;;  %v1356_v36 = vld [vmem:[#allocation4 + $0x178] sm:$0xff]  ;;  %v1355_v40 = vld [vmem:[#allocation4 + $0x170] sm:$0xff] }
  0x2b   :  { %3059 = vmatmul.mubr.msk.f32.vlgmr.msra.gmra.mrb[8].mxu0 %vm86_vm1, %v4068_v14  ;;  %3040 = vmatpush1.msk.msra.mxu1 %vm90_vm0, %v3993_v3  ;;  %v4198_v38 = vpack.c.bf16 %v1356_v36, %v1352_v34  ;;  %v1360_v43 = vld [vmem:[#allocation4 + $0x198] sm:$0xff]  ;;  %v4203_v45 = vpack.c.bf16 %v1355_v40, %v1351_v39  ;;  %v1359_v48 = vld [vmem:[#allocation4 + $0x190] sm:$0xff] }
  0x2c   :  { %3064 = vmatprep.subr.msk.mxu0 %vm90_vm0, %v84_v4  ;;  %689 = vmatprep.mubr.f32.mxu1 %v3899_v1  ;;  %v1357_v4 = vld [vmem:[#allocation4 + $0x180] sm:$0xff]  ;;  %v1364_v44 = vld [vmem:[#allocation4 + $0x1b8] sm:$0xff]  ;;  %v1363_v49 = vld [vmem:[#allocation4 + $0x1b0] sm:$0xff] }
  0x2d   :  { %3065 = vmatpush1.msk.msra.mxu0 %vm90_vm0, %v3988_v2  ;;  %1226 = vmatprep.mubr.f32.mxu0 %v3899_v1  ;;  %v4164_v2 = vpack.c.bf16 %v1353_v59, %v1349_v55  ;;  %v4206_v47 = vpack.c.bf16 %v1364_v44, %v1360_v43  ;;  %v1368_v50 = vld [vmem:[#allocation4 + $0x1d8] sm:$0xff]  ;;  %v4212_v55 = vpack.c.bf16 %v1363_v49, %v1359_v48  ;;  %v1367_v57 = vld [vmem:[#allocation4 + $0x1d0] sm:$0xff] }
  0x2e   :  { %3164 = vmatprep.subr.bf16.mxu0 %v4076_v17  ;;  %3041 = vmatmul.mubr.msk.f32.vlgmr.msra.gmra.mrb[10].mxu1 %vm86_vm1, %v3035_v8  ;;  %v1361_v8 = vld [vmem:[#allocation4 + $0x1a0] sm:$0xff]  ;;  %v1372_v51 = vld [vmem:[#allocation4 + $0x1f8] sm:$0xff]  ;;  %v1371_v59 = vld [vmem:[#allocation4 + $0x1f0] sm:$0xff] }
  0x2f   :  { %3046 = vmatprep.subr.msk.mxu1 %vm90_vm0, %v3999_v5  ;;  %3066 = vmatmul.mubr.msk.f32.vlgmr.msra.gmra.mrb[10].mxu0 %vm86_vm1, %v4087_v20  ;;  %v4215_v56 = vpack.c.bf16 %v1372_v51, %v1368_v50 }
  0x30   :  { %3166 = vmatpush1.bf16.msra.mxu0 %v4089_v21  ;;  %3047 = vmatpush1.msk.msra.mxu1 %vm90_vm0, %v3993_v3 }
  0x31   :  { %841 = vmatprep.mubr.f32.mxu1 %v3899_v1  ;;  %3168 = vmatprep.subr.bf16.mxu0 %v4094_v22 }
  0x32   :  { %3048 = vmatmul.mubr.msk.f32.vlgmr.msra.gmra.mrb[12].mxu1 %vm86_vm1, %v3042_v10  ;;  %3053 = vmatprep.subr.msk.mxu1 %vm90_vm0, %v3999_v5  ;;  %v1340_v10 = vld [vmem:[#allocation4 + $0xf8] sm:$0xff] }
  0x33   :  { %3054 = vmatpush1.msk.msra.mxu1 %vm90_vm0, %v3993_v3  ;;  %993 = vmatprep.mubr.f32.mxu1 %v3899_v1  ;;  %v4178_v15 = vpack.c.bf16 %v1340_v10, %v1336_v9  ;;  %v59_v9 = vld [vmem:[%s4653_s3] sm:$0xf] }
  0x34   :  { %3170 = vmatpush1.bf16.msra.mxu0 %v4105_v27  ;;  %3060 = vmatprep.subr.msk.mxu1 %vm90_vm0, %v3999_v5 }
  0x35   :  { %3172 = vmatprep.subr.bf16.mxu0 %v4109_v28  ;;  %1441 = vmatprep.mubr.f32.mxu0 %v3899_v1 }
  0x36   :  { %3055 = vmatmul.mubr.msk.f32.vlgmr.msra.gmra.mrb[14].mxu1 %vm86_vm1, %v3049_v11  ;;  %v1366_v11 = vld [vmem:[#allocation4 + $0x1c8] sm:$0xff] }
  0x37   :  { %3061 = vmatpush1.msk.msra.mxu1 %vm90_vm0, %v3993_v3  ;;  %1145 = vmatprep.mubr.f32.mxu1 %v3899_v1 }
  0x38   :  { %3174 = vmatpush1.bf16.msra.mxu0 %v4120_v33  ;;  %3067 = vmatprep.subr.msk.mxu1 %vm90_vm0, %v3999_v5  ;;  %v1327_v5 = vld [vmem:[#allocation4 + $0x90] sm:$0xff] }
  0x39   :  { %3176 = vmatprep.subr.bf16.mxu0 %v4123_v35  ;;  %v4172_v13 = vpack.c.bf16 %v1331_v6, %v1327_v5  ;;  %v62_v5 = vlaneseq }
  0x3a   :  { %3062 = vmatmul.mubr.msk.f32.vlgmr.msra.gmra.mrb[16].mxu1 %vm86_vm1, %v4068_v14  ;;  %v4176_v14 = vpack.c.bf16 %v1361_v8, %v1357_v4 }
  0x3b   :  { %3068 = vmatpush1.msk.msra.mxu1 %vm90_vm0, %v3993_v3  ;;  %1297 = vmatprep.mubr.f32.mxu1 %v3899_v1  ;;  %v4166_v3 = vpack.c.bf16 %v1332_v61, %v1328_v60  ;;  %v4220_v60 = vpack.c.bf16 %v1371_v59, %v1367_v57  ;;  %v63_v6 = vshrl.u32 %v62_v5, 7 }
  0x3c   :  { %3178 = vmatpush1.bf16.msra.mxu0 %v4133_v41  ;;  %3196 = vmatprep.subr.bf16.mxu1 %v4135_v42 }
  0x3d   :  { %3180 = vmatprep.subr.bf16.mxu0 %v4138_v46  ;;  %v64_v8 = vsub.s32 0, %v63_v6  ;;  %v68_v10 = vsub.s32 1, %v63_v6  ;;  %v72_v34 = vsub.s32 2, %v63_v6  ;;  %v76_v36 = vsub.s32 3, %v63_v6 }
  0x3e   :  { %3069 = vmatmul.mubr.msk.f32.vlgmr.msra.gmra.mrb[18].mxu1 %vm86_vm1, %v4087_v20  ;;  %v4181_v20 = vpack.c.bf16 %v1370_v12, %v1366_v11 }
  0x3f   :  { %3198 = vmatpush1.bf16.msra.mxu1 %v4145_v52  ;;  %1512 = vmatprep.mubr.f32.mxu1 %v3899_v1  ;;  %v4262_v11 = vrot.slane %v59_v9, %v64_v8  ;;  %v4264_v12 = vrot.slane %v59_v9, %v68_v10  ;;  %v4268_v39 = vrot.slane %v59_v9, %v72_v34 }
  0x40   :  { %3182 = vmatpush1.bf16.msra.mxu0 %v4149_v53  ;;  %3200 = vmatprep.subr.bf16.mxu1 %v4151_v54  ;;  %v4270_v40 = vrot.slane %v59_v9, %v76_v36 }
  0x41   :  { %3184 = vmatprep.subr.bf16.mxu0 %v4154_v58 }
  0x43   :  { %3202 = vmatpush1.bf16.msra.mxu1 %v4159_v0 }
  0x44   :  { %3186 = vmatpush1.bf16.msra.mxu0 %v4164_v2  ;;  %3204 = vmatprep.subr.bf16.mxu1 %v4166_v3 }
  0x45   :  { %3188 = vmatprep.subr.bf16.mxu0 %v4169_v7 }
  0x47   :  { %3206 = vmatpush1.bf16.msra.mxu1 %v4172_v13 }
  0x48   :  { %3190 = vmatpush1.bf16.msra.mxu0 %v4176_v14  ;;  %3208 = vmatprep.subr.bf16.mxu1 %v4178_v15 }
  0x49   :  { %3192 = vmatprep.subr.bf16.mxu0 %v4181_v20 }
  0x4b   :  { %3210 = vmatpush1.bf16.msra.mxu1 %v4184_v26 }
  0x4c   :  { %3194 = vmatpush1.bf16.msra.mxu0 %v4188_v29  ;;  %3212 = vmatprep.subr.bf16.mxu1 %v4190_v30 }
  0x4d   :  { %3228 = vmatprep.subr.bf16.mxu0 %v4076_v17 }
  0x4f   :  { %1442 = vmatmul.mubr.f32.vlgmr.msra.gmra.mrb[12].mxu0 %v3899_v1  ;;  %3214 = vmatpush1.bf16.msra.mxu1 %v4194_v37 }
  0x50   :  { %3216 = vmatprep.subr.bf16.mxu1 %v4198_v38  ;;  %3230 = vmatpush1.bf16.msra.mxu0 %v4089_v21 }
  0x51   :  { %3232 = vmatprep.subr.bf16.mxu0 %v4094_v22  ;;  %1609 = vmatprep.mubr.f32.mxu0 %v3899_v1 }
  0x53   :  { %3218 = vmatpush1.bf16.msra.mxu1 %v4203_v45 }
  0x54   :  { %3220 = vmatprep.subr.bf16.mxu1 %v4206_v47  ;;  %3234 = vmatpush1.bf16.msra.mxu0 %v4105_v27 }
  0x55   :  { %3236 = vmatprep.subr.bf16.mxu0 %v4109_v28 }
  0x57   :  { %3222 = vmatpush1.bf16.msra.mxu1 %v4212_v55 }
  0x58   :  { %3224 = vmatprep.subr.bf16.mxu1 %v4215_v56  ;;  %3238 = vmatpush1.bf16.msra.mxu0 %v4120_v33 }
  0x59   :  { %3240 = vmatprep.subr.bf16.mxu0 %v4123_v35 }
  0x5b   :  { %3226 = vmatpush1.bf16.msra.mxu1 %v4220_v60 }
  0x5c   :  { %3260 = vmatprep.subr.bf16.mxu1 %v4135_v42  ;;  %3242 = vmatpush1.bf16.msra.mxu0 %v4133_v41 }
  0x5d   :  { %3244 = vmatprep.subr.bf16.mxu0 %v4138_v46 }
  0x5e   :  { %1513 = vmatmul.mubr.f32.vlgmr.msra.gmra.mrb[2].mxu1 %v3899_v1 }
  0x5f   :  { %3262 = vmatpush1.bf16.msra.mxu1 %v4145_v52  ;;  %1680 = vmatprep.mubr.f32.mxu1 %v3899_v1 }
  0x60   :  { %3264 = vmatprep.subr.bf16.mxu1 %v4151_v54  ;;  %3246 = vmatpush1.bf16.msra.mxu0 %v4149_v53 }
  0x61   :  { %3248 = vmatprep.subr.bf16.mxu0 %v4154_v58 }
  0x63   :  { %3266 = vmatpush1.bf16.msra.mxu1 %v4159_v0 }
  0x64   :  { %3268 = vmatprep.subr.bf16.mxu1 %v4166_v3  ;;  %3250 = vmatpush1.bf16.msra.mxu0 %v4164_v2 }
  0x65   :  { %3252 = vmatprep.subr.bf16.mxu0 %v4169_v7 }
  0x67   :  { %3270 = vmatpush1.bf16.msra.mxu1 %v4172_v13 }
  0x68   :  { %3272 = vmatprep.subr.bf16.mxu1 %v4178_v15  ;;  %3254 = vmatpush1.bf16.msra.mxu0 %v4176_v14 }
  0x69   :  { %3256 = vmatprep.subr.bf16.mxu0 %v4181_v20 }
  0x6b   :  { %3274 = vmatpush1.bf16.msra.mxu1 %v4184_v26 }
  0x6c   :  { %3276 = vmatprep.subr.bf16.mxu1 %v4190_v30  ;;  %3258 = vmatpush1.bf16.msra.mxu0 %v4188_v29 }
  0x6d   :  { %3292 = vmatprep.subr.bf16.mxu0 %v4076_v17 }
  0x6f   :  { %3278 = vmatpush1.bf16.msra.mxu1 %v4194_v37 }
  0x70   :  { %3280 = vmatprep.subr.bf16.mxu1 %v4198_v38 }
  0x73   :  { %3282 = vmatpush1.bf16.msra.mxu1 %v4203_v45 }
  0x74   :  { %3284 = vmatprep.subr.bf16.mxu1 %v4206_v47 }
  0x77   :  { %3286 = vmatpush1.bf16.msra.mxu1 %v4212_v55 }
  0x78   :  { %3288 = vmatprep.subr.bf16.mxu1 %v4215_v56 }
  0x7b   :  { %3290 = vmatpush1.bf16.msra.mxu1 %v4220_v60 }
  0x7c   :  { %3324 = vmatprep.subr.bf16.mxu1 %v4135_v42 }
  0xed   :  { %v165_v61 = vpop.f32.mrb[0].mxu1 }
  0xee   :  { %v167_v62 = vpop.f32.mrb[1].mxu1  ;;  %v166_v16 = vadd.f32 %v165_v61, %v4262_v11 }
  0xef   :  { %v168_v18 = vadd.f32 %v167_v62, %v4264_v12 }
  0xf5   :  { %v4255_v63 = vpop.f32.mrb[4].mxu1 }
  0xf6   :  { %v4257_v4 = vpop.f32.mrb[5].mxu1 }
 0x122   :  { %v1443_v19 = vpop.f32.mrb[12].mxu0 }
 0x123   :  { %v1519_v23 = vadd.f32 %v1443_v19, %v166_v16  ;;  %v1445_v24 = vpop.f32.mrb[13].mxu0 }
 0x124   :  { %v1520_v25 = vadd.f32 %v1445_v24, %v168_v18 }
 0x125   :  { %v1523_v32 = vmul.f32 0.5, %v1519_v23 }
 0x126   :  { %v1527_v31 = vmul.f32 0.5, %v1520_v25  ;;  %v317_v25 = vadd.f32 %v4255_v63, %v4262_v11 }
 0x128   :  { %3786 = vtanh.f32 %v1527_v31  ;;  %v319_v31 = vadd.f32 %v4257_v4, %v4264_v12 }
 0x129   :  { %3788 = vtanh.f32 %v1523_v32 }
 0x131   :  { %v1514_v43 = vpop.f32.mrb[2].mxu1 }
 0x132   :  { %v3717_v44 = vadd.f32 %v1514_v43, %v4268_v39  ;;  %v1516_v48 = vpop.f32.mrb[3].mxu1  ;;  %v3787_v50 = vpop.eup %3786 }
 0x133   :  { %v3718_v49 = vadd.f32 %v1516_v48, %v4270_v40  ;;  %v3789_v51 = vpop.eup %3788  ;;  %v1529_v57 = vmul.f32 0.5, %v3787_v50 }
 0x134   :  { %3790 = vtanh.f32 %v3717_v44  ;;  %v1525_v61 = vmul.f32 0.5, %v3789_v51 }
 0x135   :  { %v1532_v59 = vmul.f32 0.5, %v3718_v49  ;;  %v1530_v62 = vadd.f32 0.5, %v1529_v57 }
 0x136   :  { %v1526_v5 = vadd.f32 0.5, %v1525_v61 }
 0x137   :  { %3792 = vtanh.f32 %v1532_v59  ;;  %v1536_v8 = vmul.f32 0.0, %v1530_v62 }
 0x13e   :  { %v3791_v6 = vpop.eup %3790 }
 0x13f   :  { %v1537_v10 = vmul.f32 %v3791_v6, %v1526_v5 }
 0x141   :  { %v4274_v9 = vadd.f32 %v1537_v10, %v1536_v8  ;;  %v3793_v16 = vpop.eup %3792 }
 0x142   :  { %v1534_v18 = vmul.f32 0.5, %v3793_v16 }
 0x143   :  { %3794 = vtanh.f32 %v4274_v9 }
 0x144   :  { %v1535_v19 = vadd.f32 0.5, %v1534_v18 }
 0x14d   :  { %v3795_v23 = vpop.eup %3794 }
 0x14e   :  { %v1540_v24 = vmul.f32 %v3795_v23, %v1535_v19 }
 0x150   :  { %1610 = vmatmul.mubr.f32.vlgmr.msra.gmra.mrb[14].mxu0 %v1540_v24  ;;  %1681 = vmatmul.mubr.f32.vlgmr.msra.gmra.mrb[6].mxu1 %v1540_v24 }
 0x151   :  { %3294 = vmatpush1.bf16.msra.mxu0 %v4089_v21  ;;  %3326 = vmatpush1.bf16.msra.mxu1 %v4145_v52 }
 0x152   :  { %3296 = vmatprep.subr.bf16.mxu0 %v4094_v22  ;;  %3328 = vmatprep.subr.bf16.mxu1 %v4151_v54 }
 0x153   :  { %1777 = vmatprep.mubr.f32.mxu0 %v3899_v1  ;;  %1848 = vmatprep.mubr.f32.mxu1 %v3899_v1 }
 0x155   :  { %3298 = vmatpush1.bf16.msra.mxu0 %v4105_v27  ;;  %3330 = vmatpush1.bf16.msra.mxu1 %v4159_v0 }
 0x156   :  { %3300 = vmatprep.subr.bf16.mxu0 %v4109_v28  ;;  %3332 = vmatprep.subr.bf16.mxu1 %v4166_v3 }
 0x159   :  { %3302 = vmatpush1.bf16.msra.mxu0 %v4120_v33  ;;  %3334 = vmatpush1.bf16.msra.mxu1 %v4172_v13 }
 0x15a   :  { %3304 = vmatprep.subr.bf16.mxu0 %v4123_v35  ;;  %3336 = vmatprep.subr.bf16.mxu1 %v4178_v15 }
 0x15d   :  { %3306 = vmatpush1.bf16.msra.mxu0 %v4133_v41  ;;  %3338 = vmatpush1.bf16.msra.mxu1 %v4184_v26 }
 0x15e   :  { %3308 = vmatprep.subr.bf16.mxu0 %v4138_v46  ;;  %3340 = vmatprep.subr.bf16.mxu1 %v4190_v30 }
 0x161   :  { %3310 = vmatpush1.bf16.msra.mxu0 %v4149_v53  ;;  %3342 = vmatpush1.bf16.msra.mxu1 %v4194_v37 }
 0x162   :  { %3312 = vmatprep.subr.bf16.mxu0 %v4154_v58  ;;  %3344 = vmatprep.subr.bf16.mxu1 %v4198_v38 }
 0x165   :  { %3314 = vmatpush1.bf16.msra.mxu0 %v4164_v2  ;;  %3346 = vmatpush1.bf16.msra.mxu1 %v4203_v45 }
 0x166   :  { %3316 = vmatprep.subr.bf16.mxu0 %v4169_v7  ;;  %3348 = vmatprep.subr.bf16.mxu1 %v4206_v47 }
 0x169   :  { %3318 = vmatpush1.bf16.msra.mxu0 %v4176_v14  ;;  %3350 = vmatpush1.bf16.msra.mxu1 %v4212_v55 }
 0x16a   :  { %3320 = vmatprep.subr.bf16.mxu0 %v4181_v20  ;;  %3352 = vmatprep.subr.bf16.mxu1 %v4215_v56 }
 0x16d   :  { %3322 = vmatpush1.bf16.msra.mxu0 %v4188_v29  ;;  %3354 = vmatpush1.bf16.msra.mxu1 %v4220_v60 }
 0x16e   :  { %3356 = vmatprep.subr.bf16.mxu0 %v4076_v17  ;;  %3388 = vmatprep.subr.bf16.mxu1 %v4135_v42 }
 0x223   :  { %v1611_v32 = vpop.f32.mrb[14].mxu0  ;;  %v1682_v34 = vpop.f32.mrb[6].mxu1 }
 0x224   :  { %v1687_v36 = vadd.f32 %v1611_v32, %v317_v25  ;;  %v1613_v43 = vpop.f32.mrb[15].mxu0  ;;  %v1684_v44 = vpop.f32.mrb[7].mxu1  ;;  %v3723_v51 = vadd.f32 %v1682_v34, %v4268_v39 }
 0x225   :  { %v1688_v48 = vadd.f32 %v1613_v43, %v319_v31  ;;  %v3724_v57 = vadd.f32 %v1684_v44, %v4270_v40 }
 0x226   :  { %v1691_v49 = vmul.f32 0.5, %v1687_v36 }
 0x227   :  { %v1695_v50 = vmul.f32 0.5, %v1688_v48  ;;  %v1700_v59 = vmul.f32 0.5, %v3724_v57 }
 0x228   :  { %3796 = vtanh.f32 %v1691_v49 }
 0x229   :  { %3798 = vtanh.f32 %v1695_v50 }
 0x22a   :  { %3800 = vtanh.f32 %v3723_v51 }
 0x22b   :  { %3802 = vtanh.f32 %v1700_v59 }
 0x232   :  { %v3797_v63 = vpop.eup %3796 }
 0x233   :  { %v3799_v61 = vpop.eup %3798  ;;  %v1693_v62 = vmul.f32 0.5, %v3797_v63 }
 0x234   :  { %v1697_v4 = vmul.f32 0.5, %v3799_v61  ;;  %v3801_v6 = vpop.eup %3800 }
 0x235   :  { %v1694_v5 = vadd.f32 0.5, %v1693_v62  ;;  %v3803_v19 = vpop.eup %3802 }
 0x236   :  { %v1698_v8 = vadd.f32 0.5, %v1697_v4  ;;  %v1702_v23 = vmul.f32 0.5, %v3803_v19 }
 0x237   :  { %v1705_v10 = vmul.f32 %v3801_v6, %v1694_v5 }
 0x238   :  { %v1704_v16 = vmul.f32 %v1698_v8, %v4274_v9  ;;  %v1703_v24 = vadd.f32 0.5, %v1702_v23 }
 0x23a   :  { %v4318_v18 = vadd.f32 %v1705_v10, %v1704_v16 }
 0x23c   :  { %3804 = vtanh.f32 %v4318_v18 }
 0x246   :  { %v3805_v25 = vpop.eup %3804 }
 0x247   :  { %v1708_v31 = vmul.f32 %v3805_v25, %v1703_v24 }
 0x249   :  { %1778 = vmatmul.mubr.f32.vlgmr.msra.gmra.mrb[0].mxu0 %v1708_v31  ;;  %1849 = vmatmul.mubr.f32.vlgmr.msra.gmra.mrb[8].mxu1 %v1708_v31 }
 0x24a   :  { %3358 = vmatpush1.bf16.msra.mxu0 %v4089_v21  ;;  %3390 = vmatpush1.bf16.msra.mxu1 %v4145_v52 }
 0x24b   :  { %3360 = vmatprep.subr.bf16.mxu0 %v4094_v22  ;;  %3392 = vmatprep.subr.bf16.mxu1 %v4151_v54 }
 0x24c   :  { %1945 = vmatprep.mubr.f32.mxu0 %v3899_v1  ;;  %2016 = vmatprep.mubr.f32.mxu1 %v3899_v1 }
 0x24e   :  { %3362 = vmatpush1.bf16.msra.mxu0 %v4105_v27  ;;  %3394 = vmatpush1.bf16.msra.mxu1 %v4159_v0 }
 0x24f   :  { %3364 = vmatprep.subr.bf16.mxu0 %v4109_v28  ;;  %3396 = vmatprep.subr.bf16.mxu1 %v4166_v3 }
 0x252   :  { %3366 = vmatpush1.bf16.msra.mxu0 %v4120_v33  ;;  %3398 = vmatpush1.bf16.msra.mxu1 %v4172_v13 }
 0x253   :  { %3368 = vmatprep.subr.bf16.mxu0 %v4123_v35  ;;  %3400 = vmatprep.subr.bf16.mxu1 %v4178_v15 }
 0x256   :  { %3370 = vmatpush1.bf16.msra.mxu0 %v4133_v41  ;;  %3402 = vmatpush1.bf16.msra.mxu1 %v4184_v26 }
 0x257   :  { %3372 = vmatprep.subr.bf16.mxu0 %v4138_v46  ;;  %3404 = vmatprep.subr.bf16.mxu1 %v4190_v30 }
 0x25a   :  { %3374 = vmatpush1.bf16.msra.mxu0 %v4149_v53  ;;  %3406 = vmatpush1.bf16.msra.mxu1 %v4194_v37 }
 0x25b   :  { %3376 = vmatprep.subr.bf16.mxu0 %v4154_v58  ;;  %3408 = vmatprep.subr.bf16.mxu1 %v4198_v38 }
 0x25e   :  { %3378 = vmatpush1.bf16.msra.mxu0 %v4164_v2  ;;  %3410 = vmatpush1.bf16.msra.mxu1 %v4203_v45 }
 0x25f   :  { %3380 = vmatprep.subr.bf16.mxu0 %v4169_v7  ;;  %3412 = vmatprep.subr.bf16.mxu1 %v4206_v47 }
 0x262   :  { %3382 = vmatpush1.bf16.msra.mxu0 %v4176_v14  ;;  %3414 = vmatpush1.bf16.msra.mxu1 %v4212_v55 }
 0x263   :  { %3384 = vmatprep.subr.bf16.mxu0 %v4181_v20  ;;  %3416 = vmatprep.subr.bf16.mxu1 %v4215_v56 }
 0x266   :  { %3386 = vmatpush1.bf16.msra.mxu0 %v4188_v29  ;;  %3418 = vmatpush1.bf16.msra.mxu1 %v4220_v60 }
 0x267   :  { %3420 = vmatprep.subr.bf16.mxu0 %v4076_v17  ;;  %3452 = vmatprep.subr.bf16.mxu1 %v4135_v42 }
 0x31c   :  { %v1779_v9 = vpop.f32.mrb[0].mxu0  ;;  %v1850_v32 = vpop.f32.mrb[8].mxu1 }
 0x31d   :  { %v3725_v34 = vadd.f32 %v1779_v9, %v4262_v11  ;;  %v1781_v36 = vpop.f32.mrb[1].mxu0  ;;  %v1852_v43 = vpop.f32.mrb[9].mxu1  ;;  %v3727_v50 = vadd.f32 %v1850_v32, %v4268_v39 }
 0x31e   :  { %v3726_v44 = vadd.f32 %v1781_v36, %v4264_v12  ;;  %v3728_v51 = vadd.f32 %v1852_v43, %v4270_v40 }
 0x31f   :  { %v1859_v48 = vmul.f32 0.5, %v3725_v34 }
 0x320   :  { %v1863_v49 = vmul.f32 0.5, %v3726_v44  ;;  %v1868_v57 = vmul.f32 0.5, %v3728_v51 }
 0x321   :  { %3806 = vtanh.f32 %v1859_v48 }
 0x322   :  { %3808 = vtanh.f32 %v1863_v49 }
 0x323   :  { %3810 = vtanh.f32 %v3727_v50 }
 0x324   :  { %3812 = vtanh.f32 %v1868_v57 }
 0x32b   :  { %v3807_v59 = vpop.eup %3806 }
 0x32c   :  { %v3809_v63 = vpop.eup %3808  ;;  %v1861_v61 = vmul.f32 0.5, %v3807_v59 }
 0x32d   :  { %v1865_v62 = vmul.f32 0.5, %v3809_v63  ;;  %v3811_v5 = vpop.eup %3810 }
 0x32e   :  { %v1862_v4 = vadd.f32 0.5, %v1861_v61  ;;  %v3813_v19 = vpop.eup %3812 }
 0x32f   :  { %v1866_v6 = vadd.f32 0.5, %v1865_v62  ;;  %v1870_v23 = vmul.f32 0.5, %v3813_v19 }
 0x330   :  { %v1873_v8 = vmul.f32 %v3811_v5, %v1862_v4 }
 0x331   :  { %v1872_v10 = vmul.f32 %v1866_v6, %v4318_v18  ;;  %v1871_v24 = vadd.f32 0.5, %v1870_v23 }
 0x333   :  { %v4360_v16 = vadd.f32 %v1873_v8, %v1872_v10 }
 0x335   :  { %3814 = vtanh.f32 %v4360_v16 }
 0x33f   :  { %v3815_v25 = vpop.eup %3814 }
 0x340   :  { %v1876_v31 = vmul.f32 %v3815_v25, %v1871_v24 }
 0x342   :  { %1946 = vmatmul.mubr.f32.vlgmr.msra.gmra.mrb[2].mxu0 %v1876_v31  ;;  %2017 = vmatmul.mubr.f32.vlgmr.msra.gmra.mrb[10].mxu1 %v1876_v31 }
 0x343   :  { %3422 = vmatpush1.bf16.msra.mxu0 %v4089_v21  ;;  %3454 = vmatpush1.bf16.msra.mxu1 %v4145_v52 }
 0x344   :  { %3424 = vmatprep.subr.bf16.mxu0 %v4094_v22  ;;  %3456 = vmatprep.subr.bf16.mxu1 %v4151_v54 }
 0x345   :  { %2113 = vmatprep.mubr.f32.mxu0 %v3899_v1  ;;  %2184 = vmatprep.mubr.f32.mxu1 %v3899_v1 }
 0x347   :  { %3426 = vmatpush1.bf16.msra.mxu0 %v4105_v27  ;;  %3458 = vmatpush1.bf16.msra.mxu1 %v4159_v0 }
 0x348   :  { %3428 = vmatprep.subr.bf16.mxu0 %v4109_v28  ;;  %3460 = vmatprep.subr.bf16.mxu1 %v4166_v3 }
 0x34b   :  { %3430 = vmatpush1.bf16.msra.mxu0 %v4120_v33  ;;  %3462 = vmatpush1.bf16.msra.mxu1 %v4172_v13 }
 0x34c   :  { %3432 = vmatprep.subr.bf16.mxu0 %v4123_v35  ;;  %3464 = vmatprep.subr.bf16.mxu1 %v4178_v15 }
 0x34f   :  { %3434 = vmatpush1.bf16.msra.mxu0 %v4133_v41  ;;  %3466 = vmatpush1.bf16.msra.mxu1 %v4184_v26 }
 0x350   :  { %3436 = vmatprep.subr.bf16.mxu0 %v4138_v46  ;;  %3468 = vmatprep.subr.bf16.mxu1 %v4190_v30 }
 0x353   :  { %3438 = vmatpush1.bf16.msra.mxu0 %v4149_v53  ;;  %3470 = vmatpush1.bf16.msra.mxu1 %v4194_v37 }
 0x354   :  { %3440 = vmatprep.subr.bf16.mxu0 %v4154_v58  ;;  %3472 = vmatprep.subr.bf16.mxu1 %v4198_v38 }
 0x357   :  { %3442 = vmatpush1.bf16.msra.mxu0 %v4164_v2  ;;  %3474 = vmatpush1.bf16.msra.mxu1 %v4203_v45 }
 0x358   :  { %3444 = vmatprep.subr.bf16.mxu0 %v4169_v7  ;;  %3476 = vmatprep.subr.bf16.mxu1 %v4206_v47 }
 0x35b   :  { %3446 = vmatpush1.bf16.msra.mxu0 %v4176_v14  ;;  %3478 = vmatpush1.bf16.msra.mxu1 %v4212_v55 }
 0x35c   :  { %3448 = vmatprep.subr.bf16.mxu0 %v4181_v20  ;;  %3480 = vmatprep.subr.bf16.mxu1 %v4215_v56 }
 0x35f   :  { %3450 = vmatpush1.bf16.msra.mxu0 %v4188_v29  ;;  %3482 = vmatpush1.bf16.msra.mxu1 %v4220_v60 }
 0x360   :  { %3484 = vmatprep.subr.bf16.mxu0 %v4076_v17  ;;  %3516 = vmatprep.subr.bf16.mxu1 %v4135_v42 }
 0x415   :  { %v1947_v18 = vpop.f32.mrb[2].mxu0  ;;  %v2018_v9 = vpop.f32.mrb[10].mxu1 }
 0x416   :  { %v3729_v32 = vadd.f32 %v1947_v18, %v4262_v11  ;;  %v1949_v34 = vpop.f32.mrb[3].mxu0  ;;  %v2020_v36 = vpop.f32.mrb[11].mxu1  ;;  %v3731_v49 = vadd.f32 %v2018_v9, %v4268_v39 }
 0x417   :  { %v3730_v43 = vadd.f32 %v1949_v34, %v4264_v12  ;;  %v3732_v50 = vadd.f32 %v2020_v36, %v4270_v40 }
 0x418   :  { %v2027_v44 = vmul.f32 0.5, %v3729_v32 }
 0x419   :  { %v2031_v48 = vmul.f32 0.5, %v3730_v43  ;;  %v2036_v51 = vmul.f32 0.5, %v3732_v50 }
 0x41a   :  { %3816 = vtanh.f32 %v2027_v44 }
 0x41b   :  { %3818 = vtanh.f32 %v2031_v48 }
 0x41c   :  { %3820 = vtanh.f32 %v3731_v49 }
 0x41d   :  { %3822 = vtanh.f32 %v2036_v51 }
 0x424   :  { %v3817_v57 = vpop.eup %3816 }
 0x425   :  { %v3819_v59 = vpop.eup %3818  ;;  %v2029_v63 = vmul.f32 0.5, %v3817_v57 }
 0x426   :  { %v2033_v61 = vmul.f32 0.5, %v3819_v59  ;;  %v3821_v4 = vpop.eup %3820 }
 0x427   :  { %v2030_v62 = vadd.f32 0.5, %v2029_v63  ;;  %v3823_v19 = vpop.eup %3822 }
 0x428   :  { %v2034_v5 = vadd.f32 0.5, %v2033_v61  ;;  %v2038_v23 = vmul.f32 0.5, %v3823_v19 }
 0x429   :  { %v2041_v6 = vmul.f32 %v3821_v4, %v2030_v62 }
 0x42a   :  { %v2040_v8 = vmul.f32 %v2034_v5, %v4360_v16  ;;  %v2039_v24 = vadd.f32 0.5, %v2038_v23 }
 0x42c   :  { %v4402_v10 = vadd.f32 %v2041_v6, %v2040_v8 }
 0x42e   :  { %3824 = vtanh.f32 %v4402_v10 }
 0x438   :  { %v3825_v25 = vpop.eup %3824 }
 0x439   :  { %v2044_v31 = vmul.f32 %v3825_v25, %v2039_v24 }
 0x43b   :  { %2114 = vmatmul.mubr.f32.vlgmr.msra.gmra.mrb[4].mxu0 %v2044_v31  ;;  %2185 = vmatmul.mubr.f32.vlgmr.msra.gmra.mrb[12].mxu1 %v2044_v31 }
 0x43c   :  { %3486 = vmatpush1.bf16.msra.mxu0 %v4089_v21  ;;  %3518 = vmatpush1.bf16.msra.mxu1 %v4145_v52 }
 0x43d   :  { %3488 = vmatprep.subr.bf16.mxu0 %v4094_v22  ;;  %3520 = vmatprep.subr.bf16.mxu1 %v4151_v54 }
 0x43e   :  { %2281 = vmatprep.mubr.f32.mxu0 %v3899_v1  ;;  %2352 = vmatprep.mubr.f32.mxu1 %v3899_v1 }
 0x440   :  { %3490 = vmatpush1.bf16.msra.mxu0 %v4105_v27  ;;  %3522 = vmatpush1.bf16.msra.mxu1 %v4159_v0 }
 0x441   :  { %3492 = vmatprep.subr.bf16.mxu0 %v4109_v28  ;;  %3524 = vmatprep.subr.bf16.mxu1 %v4166_v3 }
 0x444   :  { %3494 = vmatpush1.bf16.msra.mxu0 %v4120_v33  ;;  %3526 = vmatpush1.bf16.msra.mxu1 %v4172_v13 }
 0x445   :  { %3496 = vmatprep.subr.bf16.mxu0 %v4123_v35  ;;  %3528 = vmatprep.subr.bf16.mxu1 %v4178_v15 }
 0x448   :  { %3498 = vmatpush1.bf16.msra.mxu0 %v4133_v41  ;;  %3530 = vmatpush1.bf16.msra.mxu1 %v4184_v26 }
 0x449   :  { %3500 = vmatprep.subr.bf16.mxu0 %v4138_v46  ;;  %3532 = vmatprep.subr.bf16.mxu1 %v4190_v30 }
 0x44c   :  { %3502 = vmatpush1.bf16.msra.mxu0 %v4149_v53  ;;  %3534 = vmatpush1.bf16.msra.mxu1 %v4194_v37 }
 0x44d   :  { %3504 = vmatprep.subr.bf16.mxu0 %v4154_v58  ;;  %3536 = vmatprep.subr.bf16.mxu1 %v4198_v38 }
 0x450   :  { %3506 = vmatpush1.bf16.msra.mxu0 %v4164_v2  ;;  %3538 = vmatpush1.bf16.msra.mxu1 %v4203_v45 }
 0x451   :  { %3508 = vmatprep.subr.bf16.mxu0 %v4169_v7  ;;  %3540 = vmatprep.subr.bf16.mxu1 %v4206_v47 }
 0x454   :  { %3510 = vmatpush1.bf16.msra.mxu0 %v4176_v14  ;;  %3542 = vmatpush1.bf16.msra.mxu1 %v4212_v55 }
 0x455   :  { %3512 = vmatprep.subr.bf16.mxu0 %v4181_v20  ;;  %3544 = vmatprep.subr.bf16.mxu1 %v4215_v56 }
 0x458   :  { %3514 = vmatpush1.bf16.msra.mxu0 %v4188_v29  ;;  %3546 = vmatpush1.bf16.msra.mxu1 %v4220_v60 }
 0x459   :  { %3548 = vmatprep.subr.bf16.mxu0 %v4076_v17  ;;  %3580 = vmatprep.subr.bf16.mxu1 %v4135_v42 }
 0x50e   :  { %v2115_v16 = vpop.f32.mrb[4].mxu0  ;;  %v2186_v18 = vpop.f32.mrb[12].mxu1 }
 0x50f   :  { %v3733_v9 = vadd.f32 %v2115_v16, %v4262_v11  ;;  %v2117_v32 = vpop.f32.mrb[5].mxu0  ;;  %v2188_v34 = vpop.f32.mrb[13].mxu1  ;;  %v3735_v48 = vadd.f32 %v2186_v18, %v4268_v39 }
 0x510   :  { %v3734_v36 = vadd.f32 %v2117_v32, %v4264_v12  ;;  %v3736_v49 = vadd.f32 %v2188_v34, %v4270_v40 }
 0x511   :  { %v2195_v43 = vmul.f32 0.5, %v3733_v9 }
 0x512   :  { %v2199_v44 = vmul.f32 0.5, %v3734_v36  ;;  %v2204_v50 = vmul.f32 0.5, %v3736_v49 }
 0x513   :  { %3826 = vtanh.f32 %v2195_v43 }
 0x514   :  { %3828 = vtanh.f32 %v2199_v44 }
 0x515   :  { %3830 = vtanh.f32 %v3735_v48 }
 0x516   :  { %3832 = vtanh.f32 %v2204_v50 }
 0x51d   :  { %v3827_v51 = vpop.eup %3826 }
 0x51e   :  { %v3829_v57 = vpop.eup %3828  ;;  %v2197_v59 = vmul.f32 0.5, %v3827_v51 }
 0x51f   :  { %v2201_v63 = vmul.f32 0.5, %v3829_v57  ;;  %v3831_v62 = vpop.eup %3830 }
 0x520   :  { %v2198_v61 = vadd.f32 0.5, %v2197_v59  ;;  %v3833_v19 = vpop.eup %3832 }
 0x521   :  { %v2202_v4 = vadd.f32 0.5, %v2201_v63  ;;  %v2206_v23 = vmul.f32 0.5, %v3833_v19 }
 0x522   :  { %v2209_v5 = vmul.f32 %v3831_v62, %v2198_v61 }
 0x523   :  { %v2208_v6 = vmul.f32 %v2202_v4, %v4402_v10  ;;  %v2207_v24 = vadd.f32 0.5, %v2206_v23 }
 0x525   :  { %v4444_v8 = vadd.f32 %v2209_v5, %v2208_v6 }
 0x527   :  { %3834 = vtanh.f32 %v4444_v8 }
 0x531   :  { %v3835_v25 = vpop.eup %3834 }
 0x532   :  { %v2212_v31 = vmul.f32 %v3835_v25, %v2207_v24  ;;  %v2720_v25 = vld [vmem:[%s4654_s4 + $0x18] sm:$0xff] }
 0x534   :  { %2282 = vmatmul.mubr.f32.vlgmr.msra.gmra.mrb[6].mxu0 %v2212_v31  ;;  %2353 = vmatmul.mubr.f32.vlgmr.msra.gmra.mrb[14].mxu1 %v2212_v31 }
 0x535   :  { %3550 = vmatpush1.bf16.msra.mxu0 %v4089_v21  ;;  %3582 = vmatpush1.bf16.msra.mxu1 %v4145_v52 }
 0x536   :  { %3552 = vmatprep.subr.bf16.mxu0 %v4094_v22  ;;  %3584 = vmatprep.subr.bf16.mxu1 %v4151_v54 }
 0x537   :  { %2449 = vmatprep.mubr.f32.mxu0 %v3899_v1  ;;  %2520 = vmatprep.mubr.f32.mxu1 %v3899_v1 }
 0x539   :  { %3554 = vmatpush1.bf16.msra.mxu0 %v4105_v27  ;;  %3586 = vmatpush1.bf16.msra.mxu1 %v4159_v0 }
 0x53a   :  { %3556 = vmatprep.subr.bf16.mxu0 %v4109_v28  ;;  %3588 = vmatprep.subr.bf16.mxu1 %v4166_v3 }
 0x53d   :  { %3558 = vmatpush1.bf16.msra.mxu0 %v4120_v33  ;;  %3590 = vmatpush1.bf16.msra.mxu1 %v4172_v13 }
 0x53e   :  { %3560 = vmatprep.subr.bf16.mxu0 %v4123_v35  ;;  %3592 = vmatprep.subr.bf16.mxu1 %v4178_v15 }
 0x541   :  { %3562 = vmatpush1.bf16.msra.mxu0 %v4133_v41  ;;  %3594 = vmatpush1.bf16.msra.mxu1 %v4184_v26 }
 0x542   :  { %3564 = vmatprep.subr.bf16.mxu0 %v4138_v46  ;;  %3596 = vmatprep.subr.bf16.mxu1 %v4190_v30 }
 0x545   :  { %3566 = vmatpush1.bf16.msra.mxu0 %v4149_v53  ;;  %3598 = vmatpush1.bf16.msra.mxu1 %v4194_v37 }
 0x546   :  { %3568 = vmatprep.subr.bf16.mxu0 %v4154_v58  ;;  %3600 = vmatprep.subr.bf16.mxu1 %v4198_v38 }
 0x549   :  { %3570 = vmatpush1.bf16.msra.mxu0 %v4164_v2  ;;  %3602 = vmatpush1.bf16.msra.mxu1 %v4203_v45 }
 0x54a   :  { %3572 = vmatprep.subr.bf16.mxu0 %v4169_v7  ;;  %3604 = vmatprep.subr.bf16.mxu1 %v4206_v47 }
 0x54d   :  { %3574 = vmatpush1.bf16.msra.mxu0 %v4176_v14  ;;  %3606 = vmatpush1.bf16.msra.mxu1 %v4212_v55 }
 0x54e   :  { %3576 = vmatprep.subr.bf16.mxu0 %v4181_v20  ;;  %3608 = vmatprep.subr.bf16.mxu1 %v4215_v56 }
 0x551   :  { %3578 = vmatpush1.bf16.msra.mxu0 %v4188_v29  ;;  %3610 = vmatpush1.bf16.msra.mxu1 %v4220_v60 }
 0x552   :  { %3612 = vmatprep.subr.bf16.mxu0 %v4076_v17  ;;  %3644 = vmatprep.subr.bf16.mxu1 %v4135_v42 }
 0x607   :  { %v2283_v10 = vpop.f32.mrb[6].mxu0  ;;  %v2354_v16 = vpop.f32.mrb[14].mxu1 }
 0x608   :  { %v3737_v18 = vadd.f32 %v2283_v10, %v4262_v11  ;;  %v2285_v9 = vpop.f32.mrb[7].mxu0  ;;  %v2356_v32 = vpop.f32.mrb[15].mxu1  ;;  %v3739_v44 = vadd.f32 %v2354_v16, %v4268_v39  ;;  %v2721_v10 = vld [vmem:[%s4654_s4 + $0x20] sm:$0xff]  ;;  %v2722_v16 = vld [vmem:[%s4654_s4 + $0x28] sm:$0xff] }
 0x609   :  { %v3738_v34 = vadd.f32 %v2285_v9, %v4264_v12  ;;  %v3740_v48 = vadd.f32 %v2356_v32, %v4270_v40  ;;  %v2723_v9 = vld [vmem:[%s4654_s4 + $0x30] sm:$0xff]  ;;  %v2724_v32 = vld [vmem:[%s4654_s4 + $0x38] sm:$0xff] }
 0x60a   :  { %v2363_v36 = vmul.f32 0.5, %v3737_v18  ;;  %v3682_v18 = vpack.c.bf16 %v2722_v16, %v2721_v10 }
 0x60b   :  { %v2367_v43 = vmul.f32 0.5, %v3738_v34  ;;  %v2372_v17 = vmul.f32 0.5, %v3740_v48  ;;  %v3685_v34 = vpack.c.bf16 %v2724_v32, %v2723_v9  ;;  %v2727_v48 = vld [vmem:[%s4654_s4 + $0x50] sm:$0xff]  ;;  %v3074_v32 = vld [vmem:[%s4659_s9] ss:$0 sm:$0xff] }
 0x60c   :  { %3836 = vtanh.f32 %v2363_v36  ;;  %v2725_v36 = vld [vmem:[%s4654_s4 + $0x40] sm:$0xff] }
 0x60d   :  { %3838 = vtanh.f32 %v2367_v43  ;;  %v2726_v43 = vld [vmem:[%s4654_s4 + $0x48] sm:$0xff] }
 0x60e   :  { %3840 = vtanh.f32 %v3739_v44  ;;  %v3688_v44 = vpack.c.bf16 %v2726_v43, %v2725_v36  ;;  %v3077_v43 = vld [vmem:[%s4660_s10] ss:$0 sm:$0xff] }
 0x60f   :  { %3842 = vtanh.f32 %v2372_v17  ;;  %v2728_v17 = vld [vmem:[%s4654_s4 + $0x58] sm:$0xff] }
 0x616   :  { %v3837_v49 = vpop.eup %3836 }
 0x617   :  { %v3839_v42 = vpop.eup %3838  ;;  %v2365_v50 = vmul.f32 0.5, %v3837_v49  ;;  %v3691_v49 = vpack.c.bf16 %v2728_v17, %v2727_v48 }
 0x618   :  { %v2369_v51 = vmul.f32 0.5, %v3839_v42  ;;  %v3841_v59 = vpop.eup %3840  ;;  %v2729_v42 = vld [vmem:[%s4654_s4 + $0x60] sm:$0xff] }
 0x619   :  { %v2366_v57 = vadd.f32 0.5, %v2365_v50  ;;  %v3843_v5 = vpop.eup %3842  ;;  %v2730_v50 = vld [vmem:[%s4654_s4 + $0x68] sm:$0xff] }
 0x61a   :  { %v2370_v63 = vadd.f32 0.5, %v2369_v51  ;;  %v2374_v6 = vmul.f32 0.5, %v3843_v5  ;;  %v3694_v51 = vpack.c.bf16 %v2730_v50, %v2729_v42 }
 0x61b   :  { %v2377_v61 = vmul.f32 %v3841_v59, %v2366_v57  ;;  %v2731_v57 = vld [vmem:[%s4654_s4 + $0x70] sm:$0xff]  ;;  %v2732_v59 = vld [vmem:[%s4654_s4 + $0x78] sm:$0xff] }
 0x61c   :  { %v2376_v62 = vmul.f32 %v2370_v63, %v4444_v8  ;;  %v2375_v19 = vadd.f32 0.5, %v2374_v6  ;;  %v2719_v8 = vld [vmem:[%s4654_s4 + $0x10] sm:$0xff]  ;;  %v3697_v63 = vpack.c.bf16 %v2732_v59, %v2731_v57 }
 0x61d   :  { %v3679_v31 = vpack.c.bf16 %v2720_v25, %v2719_v8  ;;  %v2904_v25 = vld [vmem:[%s4658_s8 + $0x18] sm:$0x3f] }
 0x61e   :  { %v4486_v4 = vadd.f32 %v2377_v61, %v2376_v62 }
 0x620   :  { %3844 = vtanh.f32 %v4486_v4 }
 0x62a   :  { %v3845_v23 = vpop.eup %3844 }
 0x62b   :  { %v2380_v24 = vmul.f32 %v3845_v23, %v2375_v19 }
 0x62d   :  { %2450 = vmatmul.mubr.f32.vlgmr.msra.gmra.mrb[8].mxu0 %v2380_v24  ;;  %2521 = vmatmul.mubr.f32.vlgmr.msra.gmra.mrb[16].mxu1 %v2380_v24 }
 0x62e   :  { %3614 = vmatpush1.bf16.msra.mxu0 %v4089_v21  ;;  %3646 = vmatpush1.bf16.msra.mxu1 %v4145_v52 }
 0x62f   :  { %3616 = vmatprep.subr.bf16.mxu0 %v4094_v22  ;;  %3648 = vmatprep.subr.bf16.mxu1 %v4151_v54 }
 0x630   :  { %2617 = vmatprep.mubr.f32.mxu0 %v3899_v1  ;;  %2688 = vmatprep.mubr.f32.mxu1 %v3899_v1 }
 0x632   :  { %3618 = vmatpush1.bf16.msra.mxu0 %v4105_v27  ;;  %3650 = vmatpush1.bf16.msra.mxu1 %v4159_v0 }
 0x633   :  { %3620 = vmatprep.subr.bf16.mxu0 %v4109_v28  ;;  %3652 = vmatprep.subr.bf16.mxu1 %v4166_v3 }
 0x636   :  { %3622 = vmatpush1.bf16.msra.mxu0 %v4120_v33  ;;  %3654 = vmatpush1.bf16.msra.mxu1 %v4172_v13 }
 0x637   :  { %3624 = vmatprep.subr.bf16.mxu0 %v4123_v35  ;;  %3656 = vmatprep.subr.bf16.mxu1 %v4178_v15 }
 0x63a   :  { %3626 = vmatpush1.bf16.msra.mxu0 %v4133_v41  ;;  %3658 = vmatpush1.bf16.msra.mxu1 %v4184_v26 }
 0x63b   :  { %3628 = vmatprep.subr.bf16.mxu0 %v4138_v46  ;;  %3660 = vmatprep.subr.bf16.mxu1 %v4190_v30 }
 0x63e   :  { %3630 = vmatpush1.bf16.msra.mxu0 %v4149_v53  ;;  %3662 = vmatpush1.bf16.msra.mxu1 %v4194_v37 }
 0x63f   :  { %3632 = vmatprep.subr.bf16.mxu0 %v4154_v58  ;;  %3664 = vmatprep.subr.bf16.mxu1 %v4198_v38 }
 0x642   :  { %3634 = vmatpush1.bf16.msra.mxu0 %v4164_v2  ;;  %3666 = vmatpush1.bf16.msra.mxu1 %v4203_v45 }
 0x643   :  { %3636 = vmatprep.subr.bf16.mxu0 %v4169_v7  ;;  %3668 = vmatprep.subr.bf16.mxu1 %v4206_v47  ;;  %v2717_v47 = vld [vmem:[%s4654_s4] sm:$0xff] }
 0x646   :  { %3638 = vmatpush1.bf16.msra.mxu0 %v4176_v14  ;;  %3670 = vmatpush1.bf16.msra.mxu1 %v4212_v55  ;;  %v2718_v55 = vld [vmem:[%s4654_s4 + $0x8] sm:$0xff] }
 0x647   :  { %3640 = vmatprep.subr.bf16.mxu0 %v4181_v20  ;;  %3672 = vmatprep.subr.bf16.mxu1 %v4215_v56  ;;  %v3676_v56 = vpack.c.bf16 %v2718_v55, %v2717_v47  ;;  %v2901_v47 = vld [vmem:[%s4658_s8] sm:$0xff]  ;;  %v2902_v55 = vld [vmem:[%s4658_s8 + $0x8] sm:$0xff] }
 0x648   :  { %v3707_v8 = vpack.c.bf16 %v2902_v55, %v2901_v47 }
 0x64a   :  { %3642 = vmatpush1.bf16.msra.mxu0 %v4188_v29  ;;  %3674 = vmatpush1.bf16.msra.mxu1 %v4220_v60  ;;  %v3900_v60 = vmov 0.0|0.0  }
 0x64b   :  { %3675 = vmatprep.subr.bf16.mxu0 %v3900_v60  ;;  %3699 = vmatprep.subr.bf16.mxu1 %v3900_v60 }
 0x700   :  { %v2451_v21 = vpop.f32.mrb[8].mxu0  ;;  %v2522_v22 = vpop.f32.mrb[16].mxu1 }
 0x701   :  { %v3741_v27 = vadd.f32 %v2451_v21, %v4262_v11  ;;  %v2453_v28 = vpop.f32.mrb[9].mxu0  ;;  %v2524_v33 = vpop.f32.mrb[17].mxu1  ;;  %v3743_v52 = vadd.f32 %v2522_v22, %v4268_v39 }
 0x702   :  { %v3742_v35 = vadd.f32 %v2453_v28, %v4264_v12  ;;  %v3744_v53 = vadd.f32 %v2524_v33, %v4270_v40 }
 0x703   :  { %v2531_v41 = vmul.f32 0.5, %v3741_v27 }
 0x704   :  { %v2535_v46 = vmul.f32 0.5, %v3742_v35  ;;  %v2540_v54 = vmul.f32 0.5, %v3744_v53 }
 0x705   :  { %3846 = vtanh.f32 %v2531_v41 }
 0x706   :  { %3848 = vtanh.f32 %v2535_v46 }
 0x707   :  { %3850 = vtanh.f32 %v3743_v52 }
 0x708   :  { %3852 = vtanh.f32 %v2540_v54 }
 0x70f   :  { %v3847_v58 = vpop.eup %3846 }
 0x710   :  { %v3849_v0 = vpop.eup %3848  ;;  %v2533_v2 = vmul.f32 0.5, %v3847_v58 }
 0x711   :  { %v2537_v3 = vmul.f32 0.5, %v3849_v0  ;;  %v3851_v13 = vpop.eup %3850 }
 0x712   :  { %v2534_v7 = vadd.f32 0.5, %v2533_v2  ;;  %v3853_v29 = vpop.eup %3852 }
 0x713   :  { %v2538_v14 = vadd.f32 0.5, %v2537_v3  ;;  %v2542_v30 = vmul.f32 0.5, %v3853_v29  ;;  %v3070_v29 = vld [vmem:[%s4655_s5] ss:$0 sm:$0xff] }
 0x714   :  { %v2545_v15 = vmul.f32 %v3851_v13, %v2534_v7  ;;  %v2812_v7 = vld [vmem:[%s4656_s6 + $0x8] sm:$0xff]  ;;  %v2813_v13 = vld [vmem:[%s4656_s6 + $0x10] sm:$0xff] }
 0x715   :  { %v2544_v20 = vmul.f32 %v2538_v14, %v4486_v4  ;;  %v2543_v37 = vadd.f32 0.5, %v2542_v30 }
 0x717   :  { %v4526_v26 = vadd.f32 %v2545_v15, %v2544_v20  ;;  %v2814_v15 = vld [vmem:[%s4656_s6 + $0x18] sm:$0x3f] }
 0x718   :  { %v3703_v20 = vpack.c.bf16 %v2814_v15, %v2813_v13 }
 0x719   :  { %3854 = vtanh.f32 %v4526_v26 }
 0x723   :  { %v3855_v38 = vpop.eup %3854 }
 0x724   :  { %v2548_v45 = vmul.f32 %v3855_v38, %v2543_v37 }
 0x726   :  { %2618 = vmatmul.mubr.f32.vlgmr.msra.gmra.mrb[10].mxu0 %v2548_v45  ;;  %2689 = vmatmul.mubr.f32.vlgmr.msra.gmra.mrb[18].mxu1 %v2548_v45 }
 0x727   :  { %3677 = vmatpush3.bf16.msra.mxu0 %v3676_v56  ;;  %3138 = vmatprep.mubr.msk.f32.mxu0 %vm3901_vm2, %v3899_v1  ;;  %v2903_v56 = vld [vmem:[%s4658_s8 + $0x10] sm:$0xff] }
 0x728   :  { %3678 = vmatprep.subr.bf16.mxu0 %v3900_v60  ;;  %3149 = vmatprep.mubr.msk.f32.mxu1 %vm3901_vm2, %v3899_v1 }
 0x72b   :  { %3680 = vmatpush3.bf16.msra.mxu0 %v3679_v31  ;;  %v3710_v31 = vpack.c.bf16 %v2904_v25, %v2903_v56 }
 0x72c   :  { %3681 = vmatprep.subr.bf16.mxu0 %v3900_v60 }
 0x72f   :  { %3683 = vmatpush3.bf16.msra.mxu0 %v3682_v18 }
 0x730   :  { %3684 = vmatprep.subr.bf16.mxu0 %v3900_v60 }
 0x733   :  { %3686 = vmatpush3.bf16.msra.mxu0 %v3685_v34 }
 0x734   :  { %3687 = vmatprep.subr.bf16.mxu0 %v3900_v60 }
 0x737   :  { %3689 = vmatpush3.bf16.msra.mxu0 %v3688_v44 }
 0x738   :  { %3690 = vmatprep.subr.bf16.mxu0 %v3900_v60 }
 0x73b   :  { %3692 = vmatpush3.bf16.msra.mxu0 %v3691_v49  ;;  %v3078_v49 = vld [vmem:[#allocation3] ss:$0 sm:$0xff] }
 0x73c   :  { %3693 = vmatprep.subr.bf16.mxu0 %v3900_v60 }
 0x73f   :  { %3695 = vmatpush3.bf16.msra.mxu0 %v3694_v51 }
 0x740   :  { %3696 = vmatprep.subr.bf16.mxu0 %v3900_v60 }
 0x743   :  { %3698 = vmatpush3.bf16.msra.mxu0 %v3697_v63 }
 0x7f9   :  { %v2619_v61 = vpop.f32.mrb[10].mxu0  ;;  %v2690_v62 = vpop.f32.mrb[18].mxu1 }
 0x7fa   :  { %v3745_v4 = vadd.f32 %v2619_v61, %v4262_v11  ;;  %v2621_v5 = vpop.f32.mrb[11].mxu0  ;;  %v2692_v6 = vpop.f32.mrb[19].mxu1  ;;  %v3747_v21 = vadd.f32 %v2690_v62, %v4268_v39 }
 0x7fb   :  { %v3746_v19 = vadd.f32 %v2621_v5, %v4264_v12  ;;  %v3748_v22 = vadd.f32 %v2692_v6, %v4270_v40  ;;  %v2811_v40 = vld [vmem:[%s4656_s6] sm:$0xff] }
 0x7fc   :  { %v2699_v23 = vmul.f32 0.5, %v3745_v4  ;;  %v3700_v14 = vpack.c.bf16 %v2812_v7, %v2811_v40 }
 0x7fd   :  { %v2703_v24 = vmul.f32 0.5, %v3746_v19  ;;  %v2708_v27 = vmul.f32 0.5, %v3748_v22 }
 0x7fe   :  { %3856 = vtanh.f32 %v2699_v23  ;;  %3701 = vmatpush3.bf16.msra.mxu1 %v3700_v14 }
 0x7ff   :  { %3858 = vtanh.f32 %v2703_v24  ;;  %3702 = vmatprep.subr.bf16.mxu1 %v3900_v60 }
 0x800   :  { %3860 = vtanh.f32 %v3747_v21 }
 0x801   :  { %3862 = vtanh.f32 %v2708_v27 }
 0x802   :  { %3705 = vmatpush3.bf16.msk.msra.mxu1 %vm4608_vm5, %v3703_v20 }
 0x803   :  { %3706 = vmatprep.subr.bf16.mxu1 %v3900_v60 }
 0x808   :  { %v3857_v28 = vpop.eup %3856 }
 0x809   :  { %v3859_v33 = vpop.eup %3858  ;;  %v2701_v35 = vmul.f32 0.5, %v3857_v28 }
 0x80a   :  { %v2705_v41 = vmul.f32 0.5, %v3859_v33  ;;  %v3861_v46 = vpop.eup %3860 }
 0x80b   :  { %v2702_v11 = vadd.f32 0.5, %v2701_v35  ;;  %v3863_v58 = vpop.eup %3862 }
 0x80c   :  { %v2706_v52 = vadd.f32 0.5, %v2705_v41  ;;  %v2710_v39 = vmul.f32 0.5, %v3863_v58 }
 0x80d   :  { %v2713_v53 = vmul.f32 %v3861_v46, %v2702_v11 }
 0x80e   :  { %v2712_v12 = vmul.f32 %v2706_v52, %v4526_v26  ;;  %v2711_v0 = vadd.f32 0.5, %v2710_v39 }
 0x810   :  { %v2714_v54 = vadd.f32 %v2713_v53, %v2712_v12 }
 0x812   :  { %3864 = vtanh.f32 %v2714_v54 }
 0x81c   :  { %v3865_v2 = vpop.eup %3864 }
 0x81d   :  { %v2716_v3 = vmul.f32 %v3865_v2, %v2711_v0 }
 0x81f   :  { %3139 = vmatmul.mubr.f32.vlgmr.msra.gmra.mrb[16].mxu0 %v2716_v3 }
 0x8f2   :  { %v2806_v30 = vpop.f32.mrb[16].mxu0 }
 0x8f3   :  { %v2807_v37 = vadd.f32 %v3070_v29, %v2806_v30  ;;  %v3140_v38 = vpop.f32.mrb[17].mxu0 }
 0x8f5   :  { %3866 = vtanh.f32 %v2807_v37 }
 0x8ff   :  { %v3867_v45 = vpop.eup %3866 }
 0x900   :  { %3150 = vmatmul.mubr.msk.f32.vlgmr.msra.gmra.mrb[20].mxu1 %vm2822_vm6, %v3867_v45 }
 0x901   :  { %3160 = vmatprep.mubr.msk.f32.mxu1 %vm3901_vm2, %v3899_v1  ;;  %3708 = vmatpush3.bf16.msra.mxu1 %v3707_v8  ;;  %v3071_v1 = vld [vmem:[%s4657_s7] ss:$0 sm:$0xff] }
 0x902   :  { %3709 = vmatprep.subr.bf16.mxu1 %v3900_v60 }
 0x905   :  { %3712 = vmatpush3.bf16.msk.msra.mxu1 %vm4608_vm5, %v3710_v31 }
 0x9d3   :  { %v2896_v10 = vpop.f32.mrb[20].mxu1 }
 0x9d4   :  { %v2897_v16 = vadd.f32 %v3071_v1, %v2896_v10  ;;  %v3151_v18 = vpop.f32.mrb[21].mxu1 }
 0x9d6   :  { %3868 = vtanh.f32 %v2897_v16 }
 0x9e0   :  { %v3869_v9 = vpop.eup %3868 }
 0x9e1   :  { %3161 = vmatmul.mubr.msk.f32.vlgmr.msra.gmra.mrb[22].mxu1 %vm2822_vm6, %v3869_v9 }
 0xab4   :  { %v2984_v34 = vpop.f32.mrb[22].mxu1 }
 0xab5   :  { %v2985_v60 = vadd.f32 %v3074_v32, %v2984_v34  ;;  %v3162_v36 = vpop.f32.mrb[23].mxu1 }
 0xab7   :  { %3870 = vtanh.f32 %v2985_v60 }
 0xac1   :  { %v3871_v44 = vpop.eup %3870 }
 0xac2   :  { %v2996_v48 = vmul.f32 %v3871_v44, %v3077_v43 }
 0xac4   :  { %v2997_v17 = vsel %vm2822_vm6, %v2996_v48, 0.0 }
 0xac5   :  { %2998 = vadd.xlane.f32.xlu0 %v2997_v17 }
 0xb52   :  { %v2999_v42 = vpop.xlane.xlu0 %2998 }
 0xb53   :  { %v3007_v50 = vadd.f32 %v3078_v49, %v2999_v42 }
 0xb55   :  { %3009 = vst.msk [vmem:[%s4662_s12] sm:$0xff] %vm3008_vm7, %v3007_v50 }
 0xb56   :  { %3014 = vsyncpa [#allocation5], 1 }

</bundles_post_ra>
